<compile_context>
chip_gen: v5e
topology: v5e:2x2
jax: 0.10.0
libtpu: 0.0.40
codegen_flags: <defaults>
</compile_context>

<pallas_src>
import functools
import math

import jax
import jax.numpy as jnp
from jax.experimental import pallas as pl
from jax.experimental.pallas import tpu as pltpu

EPS = 1e-5          # nn.LayerNorm default eps
NEG_INF = -1e30     # additive bias for key_padding_mask == True


def _layernorm(t, w, b):
    m = jnp.mean(t, axis=-1, keepdims=True)
    var = jnp.mean(jnp.square(t - m), axis=-1, keepdims=True)
    return (t - m) * jax.lax.rsqrt(var + EPS) * w + b


# ----------------------------- fused block kernel ---------------------------

def fused_block_kernel(x_ref, bias_ref,
                       ln1_w, ln1_b, w_qkv, b_qkv, w_o, b_o,
                       ln2_w, ln2_b, w_fc, b_fc, w_proj, b_proj,
                       o_ref, tmp_ref, acc_ref, *, n_head):
    # Grid: (batch blocks, MLP-hidden chunks).  x_ref block: (Bt, S, D).
    k_step = pl.program_id(1)
    Bt, S, D = x_ref.shape
    R = Bt * S
    hd = D // n_head

    # ---- attention + ln_2, only on the first MLP-chunk step for this batch block
    @pl.when(k_step == 0)
    def _attention_and_init():
        x = x_ref[...].reshape(R, D)                       # f32 residual stream
        h = _layernorm(x, ln1_w[...], ln1_b[...])
        qkv = jnp.dot(h.astype(jnp.bfloat16), w_qkv[...],
                      preferred_element_type=jnp.float32) + b_qkv[...]
        bias = bias_ref[...]                               # (Bt, 1, S) key-pad bias

        # Per-head attention, batched over the Bt rows of this block.  Each
        # head's context goes straight into the VMEM scratch (no concatenate;
        # per-head intermediates die at the store).  Softmax scale is already
        # folded into the Q columns of w_qkv / b_qkv.
        for hh in range(n_head):
            sl = slice(hh * hd, (hh + 1) * hd)
            qh = qkv[:, sl].reshape(Bt, S, hd).astype(jnp.bfloat16)
            kh = qkv[:, D + hh * hd:D + (hh + 1) * hd].reshape(Bt, S, hd).astype(jnp.bfloat16)
            vh = qkv[:, 2 * D + hh * hd:2 * D + (hh + 1) * hd].reshape(Bt, S, hd).astype(jnp.bfloat16)
            s = jnp.einsum('bqd,bkd->bqk', qh, kh,
                           preferred_element_type=jnp.float32) + bias
            m = jnp.max(s, axis=-1, keepdims=True)
            p = jnp.exp(s - m)
            # approx reciprocal uses the EUP slot; ~1e-3 rel err, fine for inference.
            p = p * pl.reciprocal(jnp.sum(p, axis=-1, keepdims=True), approx=True)
            ctx_h = jnp.einsum('bqk,bkd->bqd', p.astype(jnp.bfloat16), vh,
                               preferred_element_type=jnp.float32)
            tmp_ref[:, sl] = ctx_h.reshape(R, hd)

        x_mid = x + jnp.dot(tmp_ref[...].astype(jnp.bfloat16), w_o[...],
                            preferred_element_type=jnp.float32) + b_o[...]
        acc_ref[...] = x_mid                               # residual folded into acc
        # scratch reuse: tmp now holds ln_2(x_mid), the MLP matmul input
        tmp_ref[...] = _layernorm(x_mid, ln2_w[...], ln2_b[...])

    # ---- MLP, streamed over the 4*D hidden dim (grid axis 1) ----
    h_k = jnp.dot(tmp_ref[...].astype(jnp.bfloat16), w_fc[...],
                  preferred_element_type=jnp.float32) + b_fc[...]   # (R, Kt)
    h_k = h_k * jax.nn.sigmoid(1.702 * h_k)                         # QuickGELU
    acc_ref[...] += jnp.dot(h_k.astype(jnp.bfloat16), w_proj[...],
                            preferred_element_type=jnp.float32)

    @pl.when(k_step == pl.num_programs(1) - 1)
    def _finalize():
        o_ref[...] = (acc_ref[...] + b_proj[...]).reshape(Bt, S, D).astype(o_ref.dtype)


# ----------------------------- pallas_call wrapper ---------------------------

def residual_block_pallas(x_bsd, bias_b1s, p, n_head, *, block_batch=None, kt=None):
    B, S, D = x_bsd.shape
    hidden = 4 * D

    # rows per grid step: aim for ~256 to fill the MXU M dimension
    if block_batch is None:
        target = max(1, 256 // S)
        block_batch = 1
        for cand in range(1, B + 1):
            if B % cand == 0 and cand <= target:
                block_batch = cand
    Bt = block_batch
    assert B % Bt == 0

    # chunk of the 4*D hidden dim streamed per inner grid step
    if kt is None:
        kt = hidden if hidden <= 512 else 512
    assert hidden % kt == 0 and (kt % 128 == 0 or kt == hidden)

    nb, nk = B // Bt, hidden // kt
    R = Bt * S

    def const_spec(shape):
        # blocks whose index never changes: single-buffered (halves weight VMEM)
        return pl.BlockSpec(shape, lambda b, k: (0, 0), pipeline_mode=pl.Buffered(1))

    in_specs = [
        pl.BlockSpec((Bt, S, D), lambda b, k: (b, 0, 0)),          # x (per batch block)
        pl.BlockSpec((Bt, 1, S), lambda b, k: (b, 0, 0)),          # key-padding bias
        const_spec((1, D)), const_spec((1, D)),                    # ln_1 w, b
        const_spec((D, 3 * D)), const_spec((1, 3 * D)),            # fused QKV (bf16 w)
        const_spec((D, D)), const_spec((1, D)),                    # out proj
        const_spec((1, D)), const_spec((1, D)),                    # ln_2 w, b
        pl.BlockSpec((D, kt), lambda b, k: (0, k)),                # w_fc (streamed)
        pl.BlockSpec((1, kt), lambda b, k: (0, k)),                # b_fc (streamed)
        pl.BlockSpec((kt, D), lambda b, k: (k, 0)),                # w_proj (streamed)
        const_spec((1, D)),                                        # b_proj
    ]

    operands = (x_bsd, bias_b1s,
                p['ln1_w'], p['ln1_b'], p['w_qkv'], p['b_qkv'], p['wo'], p['bo'],
                p['ln2_w'], p['ln2_b'], p['w_fc'], p['b_fc'], p['w_proj'], p['b_proj'])

    grid_spec = pltpu.PrefetchScalarGridSpec(
        num_scalar_prefetch=0,
        grid=(nb, nk),
        in_specs=in_specs,
        out_specs=pl.BlockSpec((Bt, S, D), lambda b, k: (b, 0, 0)),
        scratch_shapes=[pltpu.VMEM((R, D), jnp.float32),   # ctx, then ln_2(x_mid)
                        pltpu.VMEM((R, D), jnp.float32)],  # residual+MLP accumulator
    )

    # explicit VMEM budget: activations double-buffered + resident attn weights
    # (bf16, single-buffered) + 2-deep streamed MLP weight blocks + scratch.
    vmem_limit = int(2 * 2 * (Bt * S * D * 4)
                     + (D * 3 * D + D * D) * 2
                     + 2 * 2 * (D * kt + kt * D) * 2
                     + 2 * R * D * 4
                     + (16 << 20))
    vmem_limit = min(vmem_limit, 100 * 1024 * 1024)

    flops = B * (2 * S * D * 3 * D          # fused QKV
                 + 4 * S * S * D            # scores + ctx over all heads
                 + 2 * S * D * D            # out proj
                 + 4 * S * D * hidden)      # MLP
    transcend = B * (n_head * S * (S + 1) + S * hidden)
    bytes_accessed = int(sum(int(op.size) * op.dtype.itemsize for op in operands)
                         + B * S * D * 4)

    return pl.pallas_call(
        functools.partial(fused_block_kernel, n_head=n_head),
        grid_spec=grid_spec,
        out_shape=jax.ShapeDtypeStruct((B, S, D), jnp.float32),
        input_output_aliases={0: 0},        # reuse the activation buffer in place
        compiler_params=pltpu.CompilerParams(
            dimension_semantics=("parallel", "arbitrary"),
            vmem_limit_bytes=vmem_limit),
        cost_estimate=pl.CostEstimate(flops=int(flops), transcendentals=int(transcend),
                                      bytes_accessed=bytes_accessed),
    )(*operands)


# ----------------------------- Transformer forward --------------------------

def transformer_forward(x, padding_mask, prepared_params, n_head, *, kt=None):
    # returns (x, padding_mask) like the torch module
    # Single layout change for the whole stack: (S,B,D) -> (B,S,D).
    x_bsd = jnp.transpose(x, (1, 0, 2))
    # Layer-invariant additive key-padding bias, computed once: (B, 1, S).
    bias = jnp.where(padding_mask, NEG_INF, 0.0).astype(jnp.float32)[:, None, :]
    for p in prepared_params:
        x_bsd = residual_block_pallas(x_bsd, bias, p, n_head, kt=kt)
    return jnp.transpose(x_bsd, (1, 0, 2)), padding_mask
    # TODO(synk): attn_mask is None in this Transformer config; supporting it is
    # just one more additive (S,S) bias inside fused_block_kernel.
    # TODO(synk): when B*S is small and the layer is weight-bandwidth-bound,
    # shard the projections' output-feature dim across v7x's two TensorCores
    # instead of the batch dim, and add a cross-pallas_call weight prefetch
    # (P10) so the next layer's weights stream during this layer's compute.


# ----------------------------- parameter prep -------------------------------

def init_params(key, width, layers):
    d = width
    params = []
    for i in range(layers):
        ks = jax.random.split(jax.random.fold_in(key, i), 12)

        def rnd(k, shape, scale=0.02):
            return (scale * jax.random.normal(k, shape)).astype(jnp.float32)

        params.append(dict(
            ln1_w=1.0 + rnd(ks[0], (1, d)), ln1_b=rnd(ks[1], (1, d)),
            # fused QKV projection, pre-transposed to (in, out) = (D, 3D)
            w_qkv=rnd(ks[2], (d, 3 * d)), b_qkv=rnd(ks[3], (1, 3 * d)),
            wo=rnd(ks[4], (d, d)), bo=rnd(ks[5], (1, d)),
            ln2_w=1.0 + rnd(ks[6], (1, d)), ln2_b=rnd(ks[7], (1, d)),
            w_fc=rnd(ks[8], (d, 4 * d)), b_fc=rnd(ks[9], (1, 4 * d)),
            w_proj=rnd(ks[10], (4 * d, d)), b_proj=rnd(ks[11], (1, d)),
        ))
    return params


def prepare_params(raw_params, n_head):
    """One-time host-side prep: fold softmax scale into Q, cast matmul weights
    to bf16 (f32 accumulation in-kernel); biases / LN params stay f32."""
    prepared = []
    for p in raw_params:
        D = p['w_qkv'].shape[0]
        scale = 1.0 / math.sqrt(D // n_head)
        w_qkv = p['w_qkv'].at[:, :D].multiply(scale)
        b_qkv = p['b_qkv'].at[:, :D].multiply(scale)
        prepared.append(dict(
            ln1_w=p['ln1_w'], ln1_b=p['ln1_b'],
            w_qkv=w_qkv.astype(jnp.bfloat16), b_qkv=b_qkv.astype(jnp.float32),
            wo=p['wo'].astype(jnp.bfloat16), bo=p['bo'],
            ln2_w=p['ln2_w'], ln2_b=p['ln2_b'],
            w_fc=p['w_fc'].astype(jnp.bfloat16), b_fc=p['b_fc'],
            w_proj=p['w_proj'].astype(jnp.bfloat16), b_proj=p['b_proj'],
        ))
    return prepared


# ----------------------------- pure-JAX reference ---------------------------

def reference_transformer(x, padding_mask, all_params, n_head):
    S, B, D = x.shape
    hd = D // n_head
    bias = jnp.where(padding_mask, NEG_INF, 0.0).astype(jnp.float32)

    def ln(t, w, b):
        m = jnp.mean(t, -1, keepdims=True)
        v = jnp.mean((t - m) ** 2, -1, keepdims=True)
        return (t - m) * jax.lax.rsqrt(v + EPS) * w + b

    for p in all_params:
        h = ln(x, p['ln1_w'], p['ln1_b'])
        qkv = h @ p['w_qkv'] + p['b_qkv']
        q, k, v = qkv[..., :D], qkv[..., D:2 * D], qkv[..., 2 * D:]

        def sh(t):
            return t.reshape(S, B, n_head, hd).transpose(1, 2, 0, 3)

        qh, kh, vh = sh(q), sh(k), sh(v)
        s = jnp.einsum('bhqd,bhkd->bhqk', qh, kh) / (hd ** 0.5)
        s = s + bias[:, None, None, :]
        pa = jax.nn.softmax(s, axis=-1)
        ctx = jnp.einsum('bhqk,bhkd->bhqd', pa, vh)
        ctx = ctx.transpose(2, 0, 1, 3).reshape(S, B, D)
        x = x + ctx @ p['wo'] + p['bo']

        h = ln(x, p['ln2_w'], p['ln2_b'])
        h = h @ p['w_fc'] + p['b_fc']
        h = h * jax.nn.sigmoid(1.702 * h)
        x = x + h @ p['w_proj'] + p['b_proj']
    return x, padding_mask


# ----------------------------------- main -----------------------------------

if __name__ == "__main__":
    SEQ, BATCH, WIDTH, HEADS, LAYERS = 8, 2, 64, 4, 2

    key = jax.random.PRNGKey(0)
    kx, kp = jax.random.split(key)

    x = jax.random.normal(kx, (SEQ, BATCH, WIDTH), dtype=jnp.float32)
    # key_padding_mask: True = padded position (ignored as attention key)
    padding_mask = jnp.zeros((BATCH, SEQ), dtype=bool).at[1, 5:].set(True)

    raw_params = init_params(kp, WIDTH, LAYERS)
    params = prepare_params(raw_params, HEADS)

    # kt=128 -> 2 MLP-hidden chunks per layer, exercising the streamed path.
    fwd = jax.jit(functools.partial(transformer_forward, n_head=HEADS, kt=128))
    out, out_mask = fwd(x, padding_mask, params)
    out = jax.block_until_ready(out)

    ref_out, _ = reference_transformer(x, padding_mask, raw_params, HEADS)
    ref_out = jax.block_until_ready(ref_out)

    # Tolerance loosened for bf16 matmul inputs (f32 accumulation / residual).
    err = jnp.max(jnp.abs(out - ref_out))
    if not jnp.allclose(out, ref_out, rtol=2e-2, atol=2e-2):
        raise AssertionError(f"mismatch vs reference, max abs err={err}")
    print("KERNEL_OK")
</pallas_src>

<mosaic_0001>
module attributes {stable_mosaic.version = 11 : i64} {
  func.func @fused_block_kernel(%arg0: i32, %arg1: i32, %arg2: memref<2x8x64xf32, #tpu.memory_space<vmem>>, %arg3: memref<2x1x8xf32, #tpu.memory_space<vmem>>, %arg4: memref<1x64xf32, #tpu.memory_space<vmem>>, %arg5: memref<1x64xf32, #tpu.memory_space<vmem>>, %arg6: memref<64x192xbf16, #tpu.memory_space<vmem>>, %arg7: memref<1x192xf32, #tpu.memory_space<vmem>>, %arg8: memref<64x64xbf16, #tpu.memory_space<vmem>>, %arg9: memref<1x64xf32, #tpu.memory_space<vmem>>, %arg10: memref<1x64xf32, #tpu.memory_space<vmem>>, %arg11: memref<1x64xf32, #tpu.memory_space<vmem>>, %arg12: memref<64x128xbf16, #tpu.memory_space<vmem>>, %arg13: memref<1x128xf32, #tpu.memory_space<vmem>>, %arg14: memref<128x64xbf16, #tpu.memory_space<vmem>>, %arg15: memref<1x64xf32, #tpu.memory_space<vmem>>, %arg16: memref<2x8x64xf32, #tpu.memory_space<vmem>>, %arg17: memref<16x64xf32, #tpu.memory_space<vmem>>, %arg18: memref<16x64xf32, #tpu.memory_space<vmem>>) attributes {dimension_semantics = [#tpu.dimension_semantics<parallel>, #tpu.dimension_semantics<arbitrary>], iteration_bounds = array<i64: 1, 2>, scalar_prefetch = 0 : i64, scratch_operands = 2 : i64, tpu.core_type = #tpu.core_type<tc>, window_params = [{transform_indices = @transform_0, window_bounds = array<i64: 2, 8, 64>}, {transform_indices = @transform_1, window_bounds = array<i64: 2, 1, 8>}, {pipeline_mode = #tpu.pipeline_mode<synchronous>, transform_indices = @transform_2, window_bounds = array<i64: 1, 64>}, {pipeline_mode = #tpu.pipeline_mode<synchronous>, transform_indices = @transform_3, window_bounds = array<i64: 1, 64>}, {pipeline_mode = #tpu.pipeline_mode<synchronous>, transform_indices = @transform_4, window_bounds = array<i64: 64, 192>}, {pipeline_mode = #tpu.pipeline_mode<synchronous>, transform_indices = @transform_5, window_bounds = array<i64: 1, 192>}, {pipeline_mode = #tpu.pipeline_mode<synchronous>, transform_indices = @transform_6, window_bounds = array<i64: 64, 64>}, {pipeline_mode = #tpu.pipeline_mode<synchronous>, transform_indices = @transform_7, window_bounds = array<i64: 1, 64>}, {pipeline_mode = #tpu.pipeline_mode<synchronous>, transform_indices = @transform_8, window_bounds = array<i64: 1, 64>}, {pipeline_mode = #tpu.pipeline_mode<synchronous>, transform_indices = @transform_9, window_bounds = array<i64: 1, 64>}, {transform_indices = @transform_10, window_bounds = array<i64: 64, 128>}, {transform_indices = @transform_11, window_bounds = array<i64: 1, 128>}, {transform_indices = @transform_12, window_bounds = array<i64: 128, 64>}, {pipeline_mode = #tpu.pipeline_mode<synchronous>, transform_indices = @transform_13, window_bounds = array<i64: 1, 64>}, {transform_indices = @transform_14, window_bounds = array<i64: 2, 8, 64>}]} {
    %c0_i32 = arith.constant 0 : i32
    %0 = arith.cmpi eq, %arg1, %c0_i32 : i32
    %1 = arith.extui %0 : i1 to i32
    %c0_i32_0 = arith.constant 0 : i32
    %2 = arith.cmpi ne, %1, %c0_i32_0 : i32
    scf.if %2 {
      %c0_16 = arith.constant 0 : index
      %c0_17 = arith.constant 0 : index
      %c0_18 = arith.constant 0 : index
      %27 = vector.load %arg2[%c0_16, %c0_17, %c0_18] : memref<2x8x64xf32, #tpu.memory_space<vmem>>, vector<2x8x64xf32>
      %28 = vector.shape_cast %27 : vector<2x8x64xf32> to vector<16x64xf32>
      %c0_19 = arith.constant 0 : index
      %c0_20 = arith.constant 0 : index
      %29 = vector.load %arg4[%c0_19, %c0_20] : memref<1x64xf32, #tpu.memory_space<vmem>>, vector<1x64xf32>
      %c0_21 = arith.constant 0 : index
      %c0_22 = arith.constant 0 : index
      %30 = vector.load %arg5[%c0_21, %c0_22] : memref<1x64xf32, #tpu.memory_space<vmem>>, vector<1x64xf32>
      %cst_23 = arith.constant dense<0.000000e+00> : vector<16xf32>
      %31 = vector.multi_reduction <add>, %28, %cst_23 [1] : vector<16x64xf32> to vector<16xf32>
      %32 = vector.shape_cast %31 : vector<16xf32> to vector<16x1xf32>
      %cst_24 = arith.constant 6.400000e+01 : f32
      %33 = vector.broadcast %cst_24 : f32 to vector<16x1xf32>
      %34 = arith.divf %32, %33 : vector<16x1xf32>
      %35 = vector.broadcast %34 : vector<16x1xf32> to vector<16x64xf32>
      %36 = arith.subf %28, %35 : vector<16x64xf32>
      %37 = arith.mulf %36, %36 : vector<16x64xf32>
      %cst_25 = arith.constant dense<0.000000e+00> : vector<16xf32>
      %38 = vector.multi_reduction <add>, %37, %cst_25 [1] : vector<16x64xf32> to vector<16xf32>
      %39 = vector.shape_cast %38 : vector<16xf32> to vector<16x1xf32>
      %cst_26 = arith.constant 6.400000e+01 : f32
      %40 = vector.broadcast %cst_26 : f32 to vector<16x1xf32>
      %41 = arith.divf %39, %40 : vector<16x1xf32>
      %42 = vector.broadcast %34 : vector<16x1xf32> to vector<16x64xf32>
      %43 = arith.subf %28, %42 : vector<16x64xf32>
      %cst_27 = arith.constant 9.99999974E-6 : f32
      %44 = vector.broadcast %cst_27 : f32 to vector<16x1xf32>
      %45 = arith.addf %41, %44 : vector<16x1xf32>
      %46 = math.rsqrt %45 : vector<16x1xf32>
      %47 = vector.broadcast %46 : vector<16x1xf32> to vector<16x64xf32>
      %48 = arith.mulf %43, %47 : vector<16x64xf32>
      %49 = vector.broadcast %29 : vector<1x64xf32> to vector<16x64xf32>
      %50 = arith.mulf %48, %49 : vector<16x64xf32>
      %51 = vector.broadcast %30 : vector<1x64xf32> to vector<16x64xf32>
      %52 = arith.addf %50, %51 : vector<16x64xf32>
      %53 = arith.truncf %52 : vector<16x64xf32> to vector<16x64xbf16>
      %c0_28 = arith.constant 0 : index
      %c0_29 = arith.constant 0 : index
      %54 = vector.load %arg6[%c0_28, %c0_29] : memref<64x192xbf16, #tpu.memory_space<vmem>>, vector<64x192xbf16>
      %cst_30 = arith.constant dense<0.000000e+00> : vector<16x192xf32>
      %55 = tpu.matmul %53, %54, %cst_30 {dimension_numbers = #tpu.dot_dimension_numbers<[1], [0], [0], [1], [0, 0, 1, 1], [], []>} : vector<16x64xbf16>, vector<64x192xbf16>, vector<16x192xf32> -> vector<16x192xf32>
      %c0_31 = arith.constant 0 : index
      %c0_32 = arith.constant 0 : index
      %56 = vector.load %arg7[%c0_31, %c0_32] : memref<1x192xf32, #tpu.memory_space<vmem>>, vector<1x192xf32>
      %57 = vector.broadcast %56 : vector<1x192xf32> to vector<16x192xf32>
      %58 = arith.addf %55, %57 : vector<16x192xf32>
      %c0_33 = arith.constant 0 : index
      %c0_34 = arith.constant 0 : index
      %c0_35 = arith.constant 0 : index
      %59 = vector.load %arg3[%c0_33, %c0_34, %c0_35] : memref<2x1x8xf32, #tpu.memory_space<vmem>>, vector<2x1x8xf32>
      %60 = vector.extract_strided_slice %58 {offsets = [0, 0], sizes = [16, 16], strides = [1, 1]} : vector<16x192xf32> to vector<16x16xf32>
      %61 = vector.shape_cast %60 : vector<16x16xf32> to vector<2x8x16xf32>
      %62 = arith.truncf %61 : vector<2x8x16xf32> to vector<2x8x16xbf16>
      %63 = vector.extract_strided_slice %58 {offsets = [0, 64], sizes = [16, 16], strides = [1, 1]} : vector<16x192xf32> to vector<16x16xf32>
      %64 = vector.shape_cast %63 : vector<16x16xf32> to vector<2x8x16xf32>
      %65 = arith.truncf %64 : vector<2x8x16xf32> to vector<2x8x16xbf16>
      %66 = vector.extract_strided_slice %58 {offsets = [0, 128], sizes = [16, 16], strides = [1, 1]} : vector<16x192xf32> to vector<16x16xf32>
      %67 = vector.shape_cast %66 : vector<16x16xf32> to vector<2x8x16xf32>
      %68 = arith.truncf %67 : vector<2x8x16xf32> to vector<2x8x16xbf16>
      "tpu.trace_start"() <{level = 10 : i32, message = "bqd,bkd->bqk"}> : () -> ()
      %cst_36 = arith.constant dense<0.000000e+00> : vector<2x8x8xf32>
      %69 = tpu.matmul %62, %65, %cst_36 {dimension_numbers = #tpu.dot_dimension_numbers<[2], [2], [1], [1], [0, 0, 0, 1, 1, 1], [0], [0]>} : vector<2x8x16xbf16>, vector<2x8x16xbf16>, vector<2x8x8xf32> -> vector<2x8x8xf32>
      "tpu.trace_stop"() : () -> ()
      %70 = vector.broadcast %59 : vector<2x1x8xf32> to vector<2x8x8xf32>
      %71 = arith.addf %69, %70 : vector<2x8x8xf32>
      %cst_37 = arith.constant dense<0xFF800000> : vector<2x8xf32>
      %72 = vector.multi_reduction <maximumf>, %71, %cst_37 [2] : vector<2x8x8xf32> to vector<2x8xf32>
      %73 = vector.shape_cast %72 : vector<2x8xf32> to vector<2x8x1xf32>
      %74 = vector.broadcast %73 : vector<2x8x1xf32> to vector<2x8x8xf32>
      %75 = arith.subf %71, %74 : vector<2x8x8xf32>
      %76 = math.exp %75 : vector<2x8x8xf32>
      %cst_38 = arith.constant dense<0.000000e+00> : vector<2x8xf32>
      %77 = vector.multi_reduction <add>, %76, %cst_38 [2] : vector<2x8x8xf32> to vector<2x8xf32>
      %78 = vector.shape_cast %77 : vector<2x8xf32> to vector<2x8x1xf32>
      %79 = tpu.reciprocal %78 {approx = true} : vector<2x8x1xf32> -> vector<2x8x1xf32>
      %80 = vector.broadcast %79 : vector<2x8x1xf32> to vector<2x8x8xf32>
      %81 = arith.mulf %76, %80 : vector<2x8x8xf32>
      %82 = arith.truncf %81 : vector<2x8x8xf32> to vector<2x8x8xbf16>
      "tpu.trace_start"() <{level = 10 : i32, message = "bqk,bkd->bqd"}> : () -> ()
      %cst_39 = arith.constant dense<0.000000e+00> : vector<2x8x16xf32>
      %83 = tpu.matmul %82, %68, %cst_39 {dimension_numbers = #tpu.dot_dimension_numbers<[2], [1], [1], [2], [0, 0, 0, 1, 1, 2], [0], [0]>} : vector<2x8x8xbf16>, vector<2x8x16xbf16>, vector<2x8x16xf32> -> vector<2x8x16xf32>
      "tpu.trace_stop"() : () -> ()
      %84 = vector.shape_cast %83 : vector<2x8x16xf32> to vector<16x16xf32>
      %c0_40 = arith.constant 0 : index
      %c0_41 = arith.constant 0 : index
      %85 = vector.load %arg17[%c0_40, %c0_41] : memref<16x64xf32, #tpu.memory_space<vmem>>, vector<16x16xf32>
      tpu.vector_store %arg17[%c0_40, %c0_41], %84 {strides = array<i32>} : memref<16x64xf32, #tpu.memory_space<vmem>>, vector<16x16xf32>,
      %86 = vector.extract_strided_slice %58 {offsets = [0, 16], sizes = [16, 16], strides = [1, 1]} : vector<16x192xf32> to vector<16x16xf32>
      %87 = vector.shape_cast %86 : vector<16x16xf32> to vector<2x8x16xf32>
      %88 = arith.truncf %87 : vector<2x8x16xf32> to vector<2x8x16xbf16>
      %89 = vector.extract_strided_slice %58 {offsets = [0, 80], sizes = [16, 16], strides = [1, 1]} : vector<16x192xf32> to vector<16x16xf32>
      %90 = vector.shape_cast %89 : vector<16x16xf32> to vector<2x8x16xf32>
      %91 = arith.truncf %90 : vector<2x8x16xf32> to vector<2x8x16xbf16>
      %92 = vector.extract_strided_slice %58 {offsets = [0, 144], sizes = [16, 16], strides = [1, 1]} : vector<16x192xf32> to vector<16x16xf32>
      %93 = vector.shape_cast %92 : vector<16x16xf32> to vector<2x8x16xf32>
      %94 = arith.truncf %93 : vector<2x8x16xf32> to vector<2x8x16xbf16>
      "tpu.trace_start"() <{level = 10 : i32, message = "bqd,bkd->bqk"}> : () -> ()
      %cst_42 = arith.constant dense<0.000000e+00> : vector<2x8x8xf32>
      %95 = tpu.matmul %88, %91, %cst_42 {dimension_numbers = #tpu.dot_dimension_numbers<[2], [2], [1], [1], [0, 0, 0, 1, 1, 1], [0], [0]>} : vector<2x8x16xbf16>, vector<2x8x16xbf16>, vector<2x8x8xf32> -> vector<2x8x8xf32>
      "tpu.trace_stop"() : () -> ()
      %96 = vector.broadcast %59 : vector<2x1x8xf32> to vector<2x8x8xf32>
      %97 = arith.addf %95, %96 : vector<2x8x8xf32>
      %cst_43 = arith.constant dense<0xFF800000> : vector<2x8xf32>
      %98 = vector.multi_reduction <maximumf>, %97, %cst_43 [2] : vector<2x8x8xf32> to vector<2x8xf32>
      %99 = vector.shape_cast %98 : vector<2x8xf32> to vector<2x8x1xf32>
      %100 = vector.broadcast %99 : vector<2x8x1xf32> to vector<2x8x8xf32>
      %101 = arith.subf %97, %100 : vector<2x8x8xf32>
      %102 = math.exp %101 : vector<2x8x8xf32>
      %cst_44 = arith.constant dense<0.000000e+00> : vector<2x8xf32>
      %103 = vector.multi_reduction <add>, %102, %cst_44 [2] : vector<2x8x8xf32> to vector<2x8xf32>
      %104 = vector.shape_cast %103 : vector<2x8xf32> to vector<2x8x1xf32>
      %105 = tpu.reciprocal %104 {approx = true} : vector<2x8x1xf32> -> vector<2x8x1xf32>
      %106 = vector.broadcast %105 : vector<2x8x1xf32> to vector<2x8x8xf32>
      %107 = arith.mulf %102, %106 : vector<2x8x8xf32>
      %108 = arith.truncf %107 : vector<2x8x8xf32> to vector<2x8x8xbf16>
      "tpu.trace_start"() <{level = 10 : i32, message = "bqk,bkd->bqd"}> : () -> ()
      %cst_45 = arith.constant dense<0.000000e+00> : vector<2x8x16xf32>
      %109 = tpu.matmul %108, %94, %cst_45 {dimension_numbers = #tpu.dot_dimension_numbers<[2], [1], [1], [2], [0, 0, 0, 1, 1, 2], [0], [0]>} : vector<2x8x8xbf16>, vector<2x8x16xbf16>, vector<2x8x16xf32> -> vector<2x8x16xf32>
      "tpu.trace_stop"() : () -> ()
      %110 = vector.shape_cast %109 : vector<2x8x16xf32> to vector<16x16xf32>
      %c0_46 = arith.constant 0 : index
      %c16 = arith.constant 16 : index
      %111 = vector.load %arg17[%c0_46, %c16] : memref<16x64xf32, #tpu.memory_space<vmem>>, vector<16x16xf32>
      tpu.vector_store %arg17[%c0_46, %c16], %110 {strides = array<i32>} : memref<16x64xf32, #tpu.memory_space<vmem>>, vector<16x16xf32>,
      %112 = vector.extract_strided_slice %58 {offsets = [0, 32], sizes = [16, 16], strides = [1, 1]} : vector<16x192xf32> to vector<16x16xf32>
      %113 = vector.shape_cast %112 : vector<16x16xf32> to vector<2x8x16xf32>
      %114 = arith.truncf %113 : vector<2x8x16xf32> to vector<2x8x16xbf16>
      %115 = vector.extract_strided_slice %58 {offsets = [0, 96], sizes = [16, 16], strides = [1, 1]} : vector<16x192xf32> to vector<16x16xf32>
      %116 = vector.shape_cast %115 : vector<16x16xf32> to vector<2x8x16xf32>
      %117 = arith.truncf %116 : vector<2x8x16xf32> to vector<2x8x16xbf16>
      %118 = vector.extract_strided_slice %58 {offsets = [0, 160], sizes = [16, 16], strides = [1, 1]} : vector<16x192xf32> to vector<16x16xf32>
      %119 = vector.shape_cast %118 : vector<16x16xf32> to vector<2x8x16xf32>
      %120 = arith.truncf %119 : vector<2x8x16xf32> to vector<2x8x16xbf16>
      "tpu.trace_start"() <{level = 10 : i32, message = "bqd,bkd->bqk"}> : () -> ()
      %cst_47 = arith.constant dense<0.000000e+00> : vector<2x8x8xf32>
      %121 = tpu.matmul %114, %117, %cst_47 {dimension_numbers = #tpu.dot_dimension_numbers<[2], [2], [1], [1], [0, 0, 0, 1, 1, 1], [0], [0]>} : vector<2x8x16xbf16>, vector<2x8x16xbf16>, vector<2x8x8xf32> -> vector<2x8x8xf32>
      "tpu.trace_stop"() : () -> ()
      %122 = vector.broadcast %59 : vector<2x1x8xf32> to vector<2x8x8xf32>
      %123 = arith.addf %121, %122 : vector<2x8x8xf32>
      %cst_48 = arith.constant dense<0xFF800000> : vector<2x8xf32>
      %124 = vector.multi_reduction <maximumf>, %123, %cst_48 [2] : vector<2x8x8xf32> to vector<2x8xf32>
      %125 = vector.shape_cast %124 : vector<2x8xf32> to vector<2x8x1xf32>
      %126 = vector.broadcast %125 : vector<2x8x1xf32> to vector<2x8x8xf32>
      %127 = arith.subf %123, %126 : vector<2x8x8xf32>
      %128 = math.exp %127 : vector<2x8x8xf32>
      %cst_49 = arith.constant dense<0.000000e+00> : vector<2x8xf32>
      %129 = vector.multi_reduction <add>, %128, %cst_49 [2] : vector<2x8x8xf32> to vector<2x8xf32>
      %130 = vector.shape_cast %129 : vector<2x8xf32> to vector<2x8x1xf32>
      %131 = tpu.reciprocal %130 {approx = true} : vector<2x8x1xf32> -> vector<2x8x1xf32>
      %132 = vector.broadcast %131 : vector<2x8x1xf32> to vector<2x8x8xf32>
      %133 = arith.mulf %128, %132 : vector<2x8x8xf32>
      %134 = arith.truncf %133 : vector<2x8x8xf32> to vector<2x8x8xbf16>
      "tpu.trace_start"() <{level = 10 : i32, message = "bqk,bkd->bqd"}> : () -> ()
      %cst_50 = arith.constant dense<0.000000e+00> : vector<2x8x16xf32>
      %135 = tpu.matmul %134, %120, %cst_50 {dimension_numbers = #tpu.dot_dimension_numbers<[2], [1], [1], [2], [0, 0, 0, 1, 1, 2], [0], [0]>} : vector<2x8x8xbf16>, vector<2x8x16xbf16>, vector<2x8x16xf32> -> vector<2x8x16xf32>
      "tpu.trace_stop"() : () -> ()
      %136 = vector.shape_cast %135 : vector<2x8x16xf32> to vector<16x16xf32>
      %c0_51 = arith.constant 0 : index
      %c32 = arith.constant 32 : index
      %137 = vector.load %arg17[%c0_51, %c32] : memref<16x64xf32, #tpu.memory_space<vmem>>, vector<16x16xf32>
      tpu.vector_store %arg17[%c0_51, %c32], %136 {strides = array<i32>} : memref<16x64xf32, #tpu.memory_space<vmem>>, vector<16x16xf32>,
      %138 = vector.extract_strided_slice %58 {offsets = [0, 48], sizes = [16, 16], strides = [1, 1]} : vector<16x192xf32> to vector<16x16xf32>
      %139 = vector.shape_cast %138 : vector<16x16xf32> to vector<2x8x16xf32>
      %140 = arith.truncf %139 : vector<2x8x16xf32> to vector<2x8x16xbf16>
      %141 = vector.extract_strided_slice %58 {offsets = [0, 112], sizes = [16, 16], strides = [1, 1]} : vector<16x192xf32> to vector<16x16xf32>
      %142 = vector.shape_cast %141 : vector<16x16xf32> to vector<2x8x16xf32>
      %143 = arith.truncf %142 : vector<2x8x16xf32> to vector<2x8x16xbf16>
      %144 = vector.extract_strided_slice %58 {offsets = [0, 176], sizes = [16, 16], strides = [1, 1]} : vector<16x192xf32> to vector<16x16xf32>
      %145 = vector.shape_cast %144 : vector<16x16xf32> to vector<2x8x16xf32>
      %146 = arith.truncf %145 : vector<2x8x16xf32> to vector<2x8x16xbf16>
      "tpu.trace_start"() <{level = 10 : i32, message = "bqd,bkd->bqk"}> : () -> ()
      %cst_52 = arith.constant dense<0.000000e+00> : vector<2x8x8xf32>
      %147 = tpu.matmul %140, %143, %cst_52 {dimension_numbers = #tpu.dot_dimension_numbers<[2], [2], [1], [1], [0, 0, 0, 1, 1, 1], [0], [0]>} : vector<2x8x16xbf16>, vector<2x8x16xbf16>, vector<2x8x8xf32> -> vector<2x8x8xf32>
      "tpu.trace_stop"() : () -> ()
      %148 = vector.broadcast %59 : vector<2x1x8xf32> to vector<2x8x8xf32>
      %149 = arith.addf %147, %148 : vector<2x8x8xf32>
      %cst_53 = arith.constant dense<0xFF800000> : vector<2x8xf32>
      %150 = vector.multi_reduction <maximumf>, %149, %cst_53 [2] : vector<2x8x8xf32> to vector<2x8xf32>
      %151 = vector.shape_cast %150 : vector<2x8xf32> to vector<2x8x1xf32>
      %152 = vector.broadcast %151 : vector<2x8x1xf32> to vector<2x8x8xf32>
      %153 = arith.subf %149, %152 : vector<2x8x8xf32>
      %154 = math.exp %153 : vector<2x8x8xf32>
      %cst_54 = arith.constant dense<0.000000e+00> : vector<2x8xf32>
      %155 = vector.multi_reduction <add>, %154, %cst_54 [2] : vector<2x8x8xf32> to vector<2x8xf32>
      %156 = vector.shape_cast %155 : vector<2x8xf32> to vector<2x8x1xf32>
      %157 = tpu.reciprocal %156 {approx = true} : vector<2x8x1xf32> -> vector<2x8x1xf32>
      %158 = vector.broadcast %157 : vector<2x8x1xf32> to vector<2x8x8xf32>
      %159 = arith.mulf %154, %158 : vector<2x8x8xf32>
      %160 = arith.truncf %159 : vector<2x8x8xf32> to vector<2x8x8xbf16>
      "tpu.trace_start"() <{level = 10 : i32, message = "bqk,bkd->bqd"}> : () -> ()
      %cst_55 = arith.constant dense<0.000000e+00> : vector<2x8x16xf32>
      %161 = tpu.matmul %160, %146, %cst_55 {dimension_numbers = #tpu.dot_dimension_numbers<[2], [1], [1], [2], [0, 0, 0, 1, 1, 2], [0], [0]>} : vector<2x8x8xbf16>, vector<2x8x16xbf16>, vector<2x8x16xf32> -> vector<2x8x16xf32>
      "tpu.trace_stop"() : () -> ()
      %162 = vector.shape_cast %161 : vector<2x8x16xf32> to vector<16x16xf32>
      %c0_56 = arith.constant 0 : index
      %c48 = arith.constant 48 : index
      %163 = vector.load %arg17[%c0_56, %c48] : memref<16x64xf32, #tpu.memory_space<vmem>>, vector<16x16xf32>
      tpu.vector_store %arg17[%c0_56, %c48], %162 {strides = array<i32>} : memref<16x64xf32, #tpu.memory_space<vmem>>, vector<16x16xf32>,
      %c0_57 = arith.constant 0 : index
      %c0_58 = arith.constant 0 : index
      %164 = vector.load %arg17[%c0_57, %c0_58] : memref<16x64xf32, #tpu.memory_space<vmem>>, vector<16x64xf32>
      %165 = arith.truncf %164 : vector<16x64xf32> to vector<16x64xbf16>
      %c0_59 = arith.constant 0 : index
      %c0_60 = arith.constant 0 : index
      %166 = vector.load %arg8[%c0_59, %c0_60] : memref<64x64xbf16, #tpu.memory_space<vmem>>, vector<64x64xbf16>
      %cst_61 = arith.constant dense<0.000000e+00> : vector<16x64xf32>
      %167 = tpu.matmul %165, %166, %cst_61 {dimension_numbers = #tpu.dot_dimension_numbers<[1], [0], [0], [1], [0, 0, 1, 1], [], []>} : vector<16x64xbf16>, vector<64x64xbf16>, vector<16x64xf32> -> vector<16x64xf32>
      %168 = arith.addf %28, %167 : vector<16x64xf32>
      %c0_62 = arith.constant 0 : index
      %c0_63 = arith.constant 0 : index
      %169 = vector.load %arg9[%c0_62, %c0_63] : memref<1x64xf32, #tpu.memory_space<vmem>>, vector<1x64xf32>
      %170 = vector.broadcast %169 : vector<1x64xf32> to vector<16x64xf32>
      %171 = arith.addf %168, %170 : vector<16x64xf32>
      %c0_64 = arith.constant 0 : index
      %c0_65 = arith.constant 0 : index
      %172 = vector.load %arg18[%c0_64, %c0_65] : memref<16x64xf32, #tpu.memory_space<vmem>>, vector<16x64xf32>
      tpu.vector_store %arg18[%c0_64, %c0_65], %171 {strides = array<i32>} : memref<16x64xf32, #tpu.memory_space<vmem>>, vector<16x64xf32>,
      %c0_66 = arith.constant 0 : index
      %c0_67 = arith.constant 0 : index
      %173 = vector.load %arg10[%c0_66, %c0_67] : memref<1x64xf32, #tpu.memory_space<vmem>>, vector<1x64xf32>
      %c0_68 = arith.constant 0 : index
      %c0_69 = arith.constant 0 : index
      %174 = vector.load %arg11[%c0_68, %c0_69] : memref<1x64xf32, #tpu.memory_space<vmem>>, vector<1x64xf32>
      %cst_70 = arith.constant dense<0.000000e+00> : vector<16xf32>
      %175 = vector.multi_reduction <add>, %171, %cst_70 [1] : vector<16x64xf32> to vector<16xf32>
      %176 = vector.shape_cast %175 : vector<16xf32> to vector<16x1xf32>
      %cst_71 = arith.constant 6.400000e+01 : f32
      %177 = vector.broadcast %cst_71 : f32 to vector<16x1xf32>
      %178 = arith.divf %176, %177 : vector<16x1xf32>
      %179 = vector.broadcast %178 : vector<16x1xf32> to vector<16x64xf32>
      %180 = arith.subf %171, %179 : vector<16x64xf32>
      %181 = arith.mulf %180, %180 : vector<16x64xf32>
      %cst_72 = arith.constant dense<0.000000e+00> : vector<16xf32>
      %182 = vector.multi_reduction <add>, %181, %cst_72 [1] : vector<16x64xf32> to vector<16xf32>
      %183 = vector.shape_cast %182 : vector<16xf32> to vector<16x1xf32>
      %cst_73 = arith.constant 6.400000e+01 : f32
      %184 = vector.broadcast %cst_73 : f32 to vector<16x1xf32>
      %185 = arith.divf %183, %184 : vector<16x1xf32>
      %186 = vector.broadcast %178 : vector<16x1xf32> to vector<16x64xf32>
      %187 = arith.subf %171, %186 : vector<16x64xf32>
      %cst_74 = arith.constant 9.99999974E-6 : f32
      %188 = vector.broadcast %cst_74 : f32 to vector<16x1xf32>
      %189 = arith.addf %185, %188 : vector<16x1xf32>
      %190 = math.rsqrt %189 : vector<16x1xf32>
      %191 = vector.broadcast %190 : vector<16x1xf32> to vector<16x64xf32>
      %192 = arith.mulf %187, %191 : vector<16x64xf32>
      %193 = vector.broadcast %173 : vector<1x64xf32> to vector<16x64xf32>
      %194 = arith.mulf %192, %193 : vector<16x64xf32>
      %195 = vector.broadcast %174 : vector<1x64xf32> to vector<16x64xf32>
      %196 = arith.addf %194, %195 : vector<16x64xf32>
      %c0_75 = arith.constant 0 : index
      %c0_76 = arith.constant 0 : index
      %197 = vector.load %arg17[%c0_75, %c0_76] : memref<16x64xf32, #tpu.memory_space<vmem>>, vector<16x64xf32>
      tpu.vector_store %arg17[%c0_75, %c0_76], %196 {strides = array<i32>} : memref<16x64xf32, #tpu.memory_space<vmem>>, vector<16x64xf32>,
    } else {
    }
    %c0 = arith.constant 0 : index
    %c0_1 = arith.constant 0 : index
    %3 = vector.load %arg17[%c0, %c0_1] : memref<16x64xf32, #tpu.memory_space<vmem>>, vector<16x64xf32>
    %4 = arith.truncf %3 : vector<16x64xf32> to vector<16x64xbf16>
    %c0_2 = arith.constant 0 : index
    %c0_3 = arith.constant 0 : index
    %5 = vector.load %arg12[%c0_2, %c0_3] : memref<64x128xbf16, #tpu.memory_space<vmem>>, vector<64x128xbf16>
    %cst = arith.constant dense<0.000000e+00> : vector<16x128xf32>
    %6 = tpu.matmul %4, %5, %cst {dimension_numbers = #tpu.dot_dimension_numbers<[1], [0], [0], [1], [0, 0, 1, 1], [], []>} : vector<16x64xbf16>, vector<64x128xbf16>, vector<16x128xf32> -> vector<16x128xf32>
    %c0_4 = arith.constant 0 : index
    %c0_5 = arith.constant 0 : index
    %7 = vector.load %arg13[%c0_4, %c0_5] : memref<1x128xf32, #tpu.memory_space<vmem>>, vector<1x128xf32>
    %8 = vector.broadcast %7 : vector<1x128xf32> to vector<16x128xf32>
    %9 = arith.addf %6, %8 : vector<16x128xf32>
    %cst_6 = arith.constant 1.702000e+00 : f32
    %10 = vector.broadcast %cst_6 : f32 to vector<16x128xf32>
    %11 = arith.mulf %10, %9 : vector<16x128xf32>
    %12 = arith.negf %11 : vector<16x128xf32>
    %13 = math.exp %12 : vector<16x128xf32>
    %cst_7 = arith.constant 1.000000e+00 : f32
    %14 = vector.broadcast %cst_7 : f32 to vector<16x128xf32>
    %15 = arith.addf %14, %13 : vector<16x128xf32>
    %16 = arith.divf %14, %15 : vector<16x128xf32>
    %17 = arith.mulf %9, %16 : vector<16x128xf32>
    %c0_8 = arith.constant 0 : index
    %c0_9 = arith.constant 0 : index
    %18 = vector.load %arg18[%c0_8, %c0_9] : memref<16x64xf32, #tpu.memory_space<vmem>>, vector<16x64xf32>
    %19 = arith.truncf %17 : vector<16x128xf32> to vector<16x128xbf16>
    %c0_10 = arith.constant 0 : index
    %c0_11 = arith.constant 0 : index
    %20 = vector.load %arg14[%c0_10, %c0_11] : memref<128x64xbf16, #tpu.memory_space<vmem>>, vector<128x64xbf16>
    %cst_12 = arith.constant dense<0.000000e+00> : vector<16x64xf32>
    %21 = tpu.matmul %19, %20, %cst_12 {dimension_numbers = #tpu.dot_dimension_numbers<[1], [0], [0], [1], [0, 0, 1, 1], [], []>} : vector<16x128xbf16>, vector<128x64xbf16>, vector<16x64xf32> -> vector<16x64xf32>
    %22 = arith.addf %18, %21 : vector<16x64xf32>
    %c0_13 = arith.constant 0 : index
    %c0_14 = arith.constant 0 : index
    %23 = vector.load %arg18[%c0_13, %c0_14] : memref<16x64xf32, #tpu.memory_space<vmem>>, vector<16x64xf32>
    tpu.vector_store %arg18[%c0_13, %c0_14], %22 {strides = array<i32>} : memref<16x64xf32, #tpu.memory_space<vmem>>, vector<16x64xf32>,
    %c1_i32 = arith.constant 1 : i32
    %24 = arith.cmpi eq, %arg1, %c1_i32 : i32
    %25 = arith.extui %24 : i1 to i32
    %c0_i32_15 = arith.constant 0 : i32
    %26 = arith.cmpi ne, %25, %c0_i32_15 : i32
    scf.if %26 {
      %c0_16 = arith.constant 0 : index
      %c0_17 = arith.constant 0 : index
      %27 = vector.load %arg18[%c0_16, %c0_17] : memref<16x64xf32, #tpu.memory_space<vmem>>, vector<16x64xf32>
      %c0_18 = arith.constant 0 : index
      %c0_19 = arith.constant 0 : index
      %28 = vector.load %arg15[%c0_18, %c0_19] : memref<1x64xf32, #tpu.memory_space<vmem>>, vector<1x64xf32>
      %29 = vector.broadcast %28 : vector<1x64xf32> to vector<16x64xf32>
      %30 = arith.addf %27, %29 : vector<16x64xf32>
      %31 = vector.shape_cast %30 : vector<16x64xf32> to vector<2x8x64xf32>
      %c0_20 = arith.constant 0 : index
      %c0_21 = arith.constant 0 : index
      %c0_22 = arith.constant 0 : index
      %32 = vector.load %arg16[%c0_20, %c0_21, %c0_22] : memref<2x8x64xf32, #tpu.memory_space<vmem>>, vector<2x8x64xf32>
      tpu.vector_store %arg16[%c0_20, %c0_21, %c0_22], %31 {strides = array<i32>} : memref<2x8x64xf32, #tpu.memory_space<vmem>>, vector<2x8x64xf32>,
    } else {
    }
    return
  }
  func.func @transform_0(%arg0: i32, %arg1: i32) -> (i32, i32, i32) {
    %c0_i32 = arith.constant 0 : i32
    %c0_i32_0 = arith.constant 0 : i32
    %c0_i32_1 = arith.constant 0 : i32
    return %arg0, %c0_i32, %c0_i32_0 : i32, i32, i32
  }
  func.func @transform_1(%arg0: i32, %arg1: i32) -> (i32, i32, i32) {
    %c0_i32 = arith.constant 0 : i32
    %c0_i32_0 = arith.constant 0 : i32
    %c0_i32_1 = arith.constant 0 : i32
    return %arg0, %c0_i32, %c0_i32_0 : i32, i32, i32
  }
  func.func @transform_2(%arg0: i32, %arg1: i32) -> (i32, i32) {
    %c0_i32 = arith.constant 0 : i32
    %c0_i32_0 = arith.constant 0 : i32
    %c0_i32_1 = arith.constant 0 : i32
    return %c0_i32, %c0_i32_0 : i32, i32
  }
  func.func @transform_3(%arg0: i32, %arg1: i32) -> (i32, i32) {
    %c0_i32 = arith.constant 0 : i32
    %c0_i32_0 = arith.constant 0 : i32
    %c0_i32_1 = arith.constant 0 : i32
    return %c0_i32, %c0_i32_0 : i32, i32
  }
  func.func @transform_4(%arg0: i32, %arg1: i32) -> (i32, i32) {
    %c0_i32 = arith.constant 0 : i32
    %c0_i32_0 = arith.constant 0 : i32
    %c0_i32_1 = arith.constant 0 : i32
    return %c0_i32, %c0_i32_0 : i32, i32
  }
  func.func @transform_5(%arg0: i32, %arg1: i32) -> (i32, i32) {
    %c0_i32 = arith.constant 0 : i32
    %c0_i32_0 = arith.constant 0 : i32
    %c0_i32_1 = arith.constant 0 : i32
    return %c0_i32, %c0_i32_0 : i32, i32
  }
  func.func @transform_6(%arg0: i32, %arg1: i32) -> (i32, i32) {
    %c0_i32 = arith.constant 0 : i32
    %c0_i32_0 = arith.constant 0 : i32
    %c0_i32_1 = arith.constant 0 : i32
    return %c0_i32, %c0_i32_0 : i32, i32
  }
  func.func @transform_7(%arg0: i32, %arg1: i32) -> (i32, i32) {
    %c0_i32 = arith.constant 0 : i32
    %c0_i32_0 = arith.constant 0 : i32
    %c0_i32_1 = arith.constant 0 : i32
    return %c0_i32, %c0_i32_0 : i32, i32
  }
  func.func @transform_8(%arg0: i32, %arg1: i32) -> (i32, i32) {
    %c0_i32 = arith.constant 0 : i32
    %c0_i32_0 = arith.constant 0 : i32
    %c0_i32_1 = arith.constant 0 : i32
    return %c0_i32, %c0_i32_0 : i32, i32
  }
  func.func @transform_9(%arg0: i32, %arg1: i32) -> (i32, i32) {
    %c0_i32 = arith.constant 0 : i32
    %c0_i32_0 = arith.constant 0 : i32
    %c0_i32_1 = arith.constant 0 : i32
    return %c0_i32, %c0_i32_0 : i32, i32
  }
  func.func @transform_10(%arg0: i32, %arg1: i32) -> (i32, i32) {
    %c0_i32 = arith.constant 0 : i32
    %c0_i32_0 = arith.constant 0 : i32
    return %c0_i32, %arg1 : i32, i32
  }
  func.func @transform_11(%arg0: i32, %arg1: i32) -> (i32, i32) {
    %c0_i32 = arith.constant 0 : i32
    %c0_i32_0 = arith.constant 0 : i32
    return %c0_i32, %arg1 : i32, i32
  }
  func.func @transform_12(%arg0: i32, %arg1: i32) -> (i32, i32) {
    %c0_i32 = arith.constant 0 : i32
    %c0_i32_0 = arith.constant 0 : i32
    return %arg1, %c0_i32 : i32, i32
  }
  func.func @transform_13(%arg0: i32, %arg1: i32) -> (i32, i32) {
    %c0_i32 = arith.constant 0 : i32
    %c0_i32_0 = arith.constant 0 : i32
    %c0_i32_1 = arith.constant 0 : i32
    return %c0_i32, %c0_i32_0 : i32, i32
  }
  func.func @transform_14(%arg0: i32, %arg1: i32) -> (i32, i32, i32) {
    %c0_i32 = arith.constant 0 : i32
    %c0_i32_0 = arith.constant 0 : i32
    %c0_i32_1 = arith.constant 0 : i32
    return %arg0, %c0_i32, %c0_i32_0 : i32, i32, i32
  }
}

</mosaic_0001>

<bundles_post_ra>
// kernel: transformer_forward.2
= control target key start
LH: loop header
LB: loop body
LE: loop exit
PB: predicated region body
PF: predicated region fallthrough
CT: control target
= control target key end

     0   :  { %s2471_s0 = inlined_call_operand.vmem [shape: f32[2,8,64], index: 0, kind: input, shape index: {}, may-alias: {0,14}]   ;;  %s2472_s1 = inlined_call_operand.vmem [shape: f32[2,1,8], index: 1, kind: input, shape index: {}]   ;;  %s2473_s2 = inlined_call_operand.vmem [shape: f32[1,64], index: 2, kind: input, shape index: {}]   ;;  %s2474_s3 = inlined_call_operand.vmem [shape: f32[1,64], index: 3, kind: input, shape index: {}]   ;;  %s2475_s4 = inlined_call_operand.vmem [shape: bf16[64,192], index: 4, kind: input, shape index: {}]   ;;  %s2476_s5 = inlined_call_operand.vmem [shape: f32[1,192], index: 5, kind: input, shape index: {}]   ;;  %s2477_s6 = inlined_call_operand.vmem [shape: bf16[64,64], index: 6, kind: input, shape index: {}]   ;;  %s2478_s7 = inlined_call_operand.vmem [shape: f32[1,64], index: 7, kind: input, shape index: {}]   ;;  %s2479_s8 = inlined_call_operand.vmem [shape: f32[1,64], index: 8, kind: input, shape index: {}]   ;;  %s2480_s9 = inlined_call_operand.vmem [shape: f32[1,64], index: 9, kind: input, shape index: {}]   ;;  %s2481_s10 = inlined_call_operand.vmem [shape: bf16[64,256], index: 10, kind: input, shape index: {}]   ;;  %s2482_s11 = inlined_call_operand.vmem [shape: f32[1,256], index: 11, kind: input, shape index: {}]   ;;  %s2483_s12 = inlined_call_operand.vmem [shape: bf16[256,64], index: 12, kind: input, shape index: {}]   ;;  %s2484_s13 = inlined_call_operand.vmem [shape: f32[1,64], index: 13, kind: input, shape index: {}]   ;;  %s2485_s14 = inlined_call_operand.vmem [shape: f32[2,8,64], index: 14, kind: output, shape index: {}, may-alias: {0,14}]  }
   0x1   :  { %2488 = sst [smem:[#allocation7_spill]] %s2481_s10 }
   0x2   :  { %s2111_s29 = smov 0   ;;  %s2113_s30 = smov 0  }
   0x3   :  { %s2115_s15 = smov 0   ;;  %s2117_s16 = smov 0  }
   0x4   :  { %s2119_s17 = smov 0  }
   0x5 LB: > { %2489 = sst [smem:[#allocation5_spill]] %s2022_s16  ;;  %s33_s18 = sadd.s32 1, %s2022_s16  ;;  %s2026_s17 = sphi %s2119_s17, %s24_s17   ;;  %s2022_s16 = sphi %s2117_s16, %s2494_s16   ;;  %s2018_s15 = sphi %s2115_s15, %s2493_s15   ;;  %s2014_s30 = sphi %s2113_s30, %s2496_s30   ;;  %s2010_s29 = sphi %s2111_s29, %s2495_s29  }
   0x6   : > { %p34_p0 = scmp.ge.s32.totalorder %s33_s18, 2  ;;  %p270_p1 = scmp.ne.s32.totalorder %s2014_s30, %s2010_s29 }
   0x7   : > { %p271_p2 = scmp.eq.s32.totalorder %s2026_s17, 0  ;;  %s263_s20 = sadd.s32 1, %s2014_s30 }
   0x8   : > { %s2498_s18 = smov (%p34_p0, %s33_s18), 0  ;;  %p1726_p5 = scmp.ge.s32.totalorder %s2026_s17, 2 }
   0x9   : > { %2490 = sst [smem:[#allocation6_spill]] %s2498_s18  ;;  %p272_p3 = por %p271_p2, %p270_p1 }
   0xa   : > { %s260_s19 = ssub.s32 %s2022_s16, %s2498_s18  ;;  %439 = sbr.rel (%p1726_p5) target bundleno = 33 (0x21), region = 60 }
   0xb   : > { %p261_p4 = scmp.eq.s32.totalorder %s260_s19, 0 }
   0xd   : > { %s2146_s21 = scalar_select %p261_p4, %s2014_s30, %s263_s20  }
   0xf   : > { %442 = sbr.rel (!%p272_p3) target bundleno = 33 (0x21), region = 64  ;;  %s444_s22 = sand.u32 (%p272_p3), 1, %s2014_s30  }
  0x10   : > { %s1728_s23 = sshll.u32 (%p272_p3), %s2022_s16, 2  ;;  %s1727_s24 = sshll.u32 (%p272_p3), %s444_s22, 5 }
  0x11   : > { %s2491_s10 = sld [smem:[#allocation7_spill]] (%p272_p3)  ;;  %s446_s28 = scalar_lea.vmem (%p272_p3), [#allocation4], %s1727_s24 }
  0x17   : > { %s448_s27 = scalar_lea.vmem %s2491_s10, %s1728_s23 }
  0x18   : > { %v465_v0 = vld [vmem:[%s448_s27] sm:$0xf]  ;;  %v467_v1 = vld [vmem:[%s448_s27 + $0x8] sm:$0xf]  ;;  %v469_v2 = vld [vmem:[%s448_s27 + $0x10] sm:$0xf] }
  0x19   : > { %466 = vst [vmem:[%s446_s28] sm:$0xf] %v465_v0  ;;  %v471_v3 = vld [vmem:[%s448_s27 + $0x18] sm:$0xf]  ;;  %v473_v4 = vld [vmem:[%s448_s27 + $0x20] sm:$0xf] }
  0x1a   : > { %468 = vst [vmem:[%s446_s28 + $0x4] sm:$0xf] %v467_v1  ;;  %v475_v5 = vld [vmem:[%s448_s27 + $0x28] sm:$0xf]  ;;  %v477_v6 = vld [vmem:[%s448_s27 + $0x30] sm:$0xf] }
  0x1b   : > { %470 = vst [vmem:[%s446_s28 + $0x8] sm:$0xf] %v469_v2  ;;  %v479_v7 = vld [vmem:[%s448_s27 + $0x38] sm:$0xf] }
  0x1c   : > { %472 = vst [vmem:[%s446_s28 + $0xc] sm:$0xf] %v471_v3 }
  0x1d   : > { %474 = vst [vmem:[%s446_s28 + $0x10] sm:$0xf] %v473_v4 }
  0x1e   : > { %476 = vst [vmem:[%s446_s28 + $0x14] sm:$0xf] %v475_v5 }
  0x1f   : > { %478 = vst [vmem:[%s446_s28 + $0x18] sm:$0xf] %v477_v6 }
  0x20   : > { %480 = vst [vmem:[%s446_s28 + $0x1c] sm:$0xf] %v479_v7 }
  0x21 PF: > { %p1729_p6 = scmp.ge.s32.totalorder %s2026_s17, 1  ;;  %p534_p7 = scmp.lt.s32.totalorder %s2026_s17, 3 }
  0x23   : > { %p535_p8 = pnand %p1729_p6, %p534_p7 }
  0x24   : > { %s541_s19 = sand.u32 (!%p535_p8), 1, %s2010_s29   ;;  %p614_p9 = scmp.lt.s32.totalorder (!%p535_p8), %s2018_s15, 1 }
  0x25   : > { %538 = sbr.rel (%p535_p8) target bundleno = 2021 (0x7e5), region = 113  ;;  %s1730_s20 = sshll.u32 (!%p535_p8), %s541_s19, 5 }
  0x26   : > { %s1731_s22 = sshll.u32 (!%p535_p8), %s2018_s15, 4  ;;  %s2171_s16 = scalar_lea.vmem (!%p535_p8), [#allocation4], %s1730_s20 }
  0x27   : > { %p618_p10 = scmp.lt.s32.totalorder (!%p535_p8), %s1731_s22, 31  ;;  %p1733_p11 = scmp.ne.s32.totalorder (!%p535_p8), %s2018_s15, 0 }
  0x2a   : > { %s2160_s23 = scalar_select %p614_p9, %s2018_s15, 1 }
  0x2b   : > { %s2500_s22 = smov (!%p618_p10, %s1731_s22), 31  ;;  %633 = sbr.rel (%p1733_p11) target bundleno = 1688 (0x698), region = 121 }
  0x2c   : > { %s1732_s27 = sshll.u32 %s2500_s22, 2  ;;  %s2029_s26 = smov (!%p1733_p11), 48  }
  0x2d   : > { %s2169_s18 = scalar_lea.vmem %s2483_s12, %s1732_s27  ;;  %s2030_s24 = smov (!%p1733_p11), 64  }
  0x2e   : > { %s2031_s10 = smov (!%p1733_p11), 32   ;;  %s2032_s20 = smov (!%p1733_p11), 96  }
  0x2f   : > { %s2033_s25 = smov (!%p1733_p11), 16   ;;  %s2034_s27 = smov (!%p1733_p11), 112  }
  0x30   : > { %v2177_v8 = vld [vmem:[%s2471_s0] sm:$0xff]  ;;  %vm638_vm0 = vcmask 523264   ;;  %v2184_v10 = vld [vmem:[%s2471_s0 + $0x8] sm:$0xff]  ;;  %v2028_v12 = vmov 64.0   ;;  %v1760_v29 = vld [vmem:[%s2475_s4 + $0x30] sm:$0xf] }
  0x31   : > { %v639_v9 = vsel %vm638_vm0, %v2177_v8, 0.0  ;;  %v642_v11 = vsel %vm638_vm0, %v2184_v10, 0.0  ;;  %1936 = vrcp.f32 %v2028_v12  ;;  %v1864_v30 = vld [vmem:[%s2475_s4 + $0x34] sm:$0xf0]  ;;  %v1863_v31 = vld [vmem:[%s2475_s4 + $0x34] sm:$0xf] }
  0x32   : > { %640 = vadd.xlane.f32.xlu0 %v639_v9  ;;  %v1761_v32 = vor.u32 %v1864_v30, %v1760_v29  ;;  %v1762_v33 = vld [vmem:[%s2475_s4 + $0x38] sm:$0xf0]  ;;  %v1752_v35 = vld [vmem:[%s2475_s4 + $0x20] sm:$0xf]  ;;  %v1862_v36 = vld [vmem:[%s2475_s4 + $0x24] sm:$0xf0] }
  0x33   : > { %v1765_v34 = vor.u32 %v1863_v31, %v1762_v33  ;;  %v1861_v37 = vld [vmem:[%s2475_s4 + $0x24] sm:$0xf]  ;;  %v1753_v38 = vor.u32 %v1862_v36, %v1752_v35  ;;  %v1754_v39 = vld [vmem:[%s2475_s4 + $0x28] sm:$0xf0]  ;;  %v1744_v41 = vld [vmem:[%s2475_s4 + $0x10] sm:$0xf] }
  0x34   : > { %762 = vmatpush.bf16.msra.mxu0 %v1761_v32  ;;  %v1757_v40 = vor.u32 %v1861_v37, %v1754_v39  ;;  %v1860_v42 = vld [vmem:[%s2475_s4 + $0x14] sm:$0xf0]  ;;  %v1859_v43 = vld [vmem:[%s2475_s4 + $0x14] sm:$0xf]  ;;  %v1746_v45 = vld [vmem:[%s2475_s4 + $0x18] sm:$0xf0] }
  0x35   : > { %776 = vmatpush.bf16.msra.mxu1 %v1765_v34  ;;  %v1745_v44 = vor.u32 %v1860_v42, %v1744_v41  ;;  %v1749_v46 = vor.u32 %v1859_v43, %v1746_v45  ;;  %v1736_v47 = vld [vmem:[%s2475_s4] sm:$0xf]  ;;  %v1858_v48 = vld [vmem:[%s2475_s4 + $0x4] sm:$0xf0]  ;;  %v1857_v49 = vld [vmem:[%s2475_s4 + $0x4] sm:$0xf] }
  0x36   : > { %v1737_v51 = vor.u32 %v1858_v48, %v1736_v47  ;;  %v1738_v52 = vld [vmem:[%s2475_s4 + $0x8] sm:$0xf0]  ;;  %v1929_v9 = vld [vmem:[%s2473_s2] ss:$0 sm:$0xff]  ;;  %s2035_s28 = smov 80   ;;  %vm803_vm8 = vcmask 130048  }
  0x37   : > { %v1937_v13 = vpop.eup %1936  ;;  %v1741_v54 = vor.u32 %v1857_v49, %v1738_v52  ;;  %vm875_vm9 = vcmask 1043456   ;;  %vm847_vm10 = vcmask 64512   ;;  %vm1039_vm11 = vcmask 261248  }
  0x38   : > { %v646_v14 = vmul.f32 64.0, %v1937_v13  ;;  %vm650_vm1 = vweird.f32 %v1937_v13  ;;  %763 = vmatpush.bf16.msra.mxu0 %v1753_v38  ;;  %vm1162_vm12 = vcmask 392448   ;;  %vm1285_vm13 = vcmask 523648  }
  0x39   : > { %777 = vmatpush.bf16.msra.mxu1 %v1757_v40 }
  0x3a   : > { %643 = vadd.xlane.f32.xlu0 %v642_v11  ;;  %v647_v15 = vsub.f32 1.0, %v646_v14 }
  0x3c   : > { %v648_v16 = vmul.f32 %v1937_v13, %v647_v15  ;;  %764 = vmatpush.bf16.msra.mxu0 %v1745_v44  ;;  %v1930_v15 = vld [vmem:[%s2474_s3] ss:$0 sm:$0xff] }
  0x3d   : > { %778 = vmatpush.bf16.msra.mxu1 %v1749_v46 }
  0x3e   : > { %v649_v17 = vadd.f32 %v1937_v13, %v648_v16 }
  0x40   : > { %v2188_v18 = vsel %vm650_vm1, %v1937_v13, %v649_v17  ;;  %765 = vmatpush.bf16.msra.mxu0 %v1737_v51 }
  0x41   : > { %779 = vmatpush.bf16.msra.mxu1 %v1741_v54 }
  0xa5   : > { %v641_v19 = vpop.xlane.xlu0 %640 }
  0xa6   : > { %v652_v20 = vmul.f32 %v2188_v18, %v641_v19 }
  0xa8   : > { %v2192_v21 = vsub.f32 %v2177_v8, %v652_v20 }
  0xaa   : > { %v656_v22 = vmul.f32 %v2192_v21, %v2192_v21 }
  0xac   : > { %v658_v23 = vsel %vm638_vm0, %v656_v22, 0.0 }
  0xad   : > { %659 = vadd.xlane.f32.xlu1 %v658_v23  ;;  %v644_v24 = vpop.xlane.xlu0 %643 }
  0xae   : > { %v653_v25 = vmul.f32 %v2188_v18, %v644_v24 }
  0xb0   : > { %v2199_v26 = vsub.f32 %v2184_v10, %v653_v25 }
  0xb2   : > { %v657_v27 = vmul.f32 %v2199_v26, %v2199_v26 }
  0xb4   : > { %v661_v28 = vsel %vm638_vm0, %v657_v27, 0.0 }
  0xb5   : > { %662 = vadd.xlane.f32.xlu1 %v661_v28 }
 0x120   : > { %v660_v50 = vpop.xlane.xlu1 %659 }
 0x121   : > { %v664_v53 = vmul.f32 %v660_v50, %v2188_v18 }
 0x123   : > { %v666_v55 = vadd.f32 1e-05, %v664_v53 }
 0x125   : > { %1938 = vrsqrt.f32 %v666_v55  ;;  %vm674_vm3 = vweird.f32 %v666_v55 }
 0x128   : > { %v663_v56 = vpop.xlane.xlu1 %662 }
 0x129   : > { %v665_v57 = vmul.f32 %v663_v56, %v2188_v18 }
 0x12b   : > { %v1939_v58 = vpop.eup %1938  ;;  %v667_v59 = vadd.f32 1e-05, %v665_v57 }
 0x12c   : > { %v669_v60 = vmul.f32 %v1939_v58, %v666_v55  ;;  %vm675_vm2 = vweird.f32 %v1939_v58 }
 0x12d   : > { %1940 = vrsqrt.f32 %v667_v59  ;;  %vm676_vm4 = vmor %vm674_vm3, %vm675_vm2  ;;  %vm684_vm6 = vweird.f32 %v667_v59 }
 0x12e   : > { %v670_v61 = vmul.f32 %v1939_v58, %v669_v60 }
 0x130   : > { %v671_v62 = vmul.f32 0.5, %v670_v61 }
 0x132   : > { %v672_v63 = vsub.f32 1.5, %v671_v62 }
 0x133   : > { %v1941_v0 = vpop.eup %1940 }
 0x134   : > { %v673_v1 = vmul.f32 %v1939_v58, %v672_v63  ;;  %v679_v2 = vmul.f32 %v1941_v0, %v667_v59  ;;  %vm685_vm5 = vweird.f32 %v1941_v0 }
 0x135   : > { %vm686_vm7 = vmor %vm684_vm6, %vm685_vm5 }
 0x136   : > { %v680_v3 = vmul.f32 %v1941_v0, %v679_v2  ;;  %v677_v4 = vsel %vm676_vm4, %v1939_v58, %v673_v1 }
 0x137   : > { %v688_v7 = vmul.f32 %v677_v4, %v2192_v21  ;;  %v709_v21 = vld [vmem:[%s2476_s5] sm:$0x3] }
 0x138   : > { %v681_v5 = vmul.f32 0.5, %v680_v3  ;;  %v711_v22 = vperm.slane %v709_v21, 0  ;;  %v712_v33 = vperm.slane %v709_v21, 1  ;;  %v1932_v4 = vld [vmem:[%s2472_s1 + $0x1] ss:$0 sm:$0xff] }
 0x139   : > { %v693_v14 = vmul.f32 %v1929_v9, %v688_v7 }
 0x13a   : > { %v682_v6 = vsub.f32 1.5, %v681_v5 }
 0x13b   : > { %v698_v17 = vadd.f32 %v1930_v15, %v693_v14 }
 0x13c   : > { %v683_v11 = vmul.f32 %v1941_v0, %v682_v6 }
 0x13e   : > { %v687_v12 = vsel %vm686_vm7, %v1941_v0, %v683_v11  ;;  %v1931_v0 = vld [vmem:[%s2472_s1] ss:$0 sm:$0xff] }
 0x13f   : > { %v689_v13 = vmul.f32 %v687_v12, %v2199_v26 }
 0x141   : > { %v694_v16 = vmul.f32 %v1929_v9, %v689_v13 }
 0x143   : > { %v699_v19 = vadd.f32 %v1930_v15, %v694_v16 }
 0x145   : > { %v700_v20 = vpack.c.bf16 %v699_v19, %v698_v17 }
 0x147   : > { %1766 = vmatmul.msk.bf16.vlgmr.msra.gmra.mxu0 %vm638_vm0, %v700_v20  ;;  %1767 = vmatmul.msk.bf16.vlgmr.msra.gmra.mxu1 %vm638_vm0, %v700_v20 }
 0x1c4   : > { %v767_v23 = vpop.f32.mrf.mxu0  ;;  %v781_v34 = vpop.f32.mrf.mxu1 }
 0x1c5   : > { %v768_v24 = vadd.f32 %v767_v23, %v711_v22  ;;  %v782_v35 = vadd.f32 %v781_v34, %v712_v33 }
 0x1c7   : > { %v788_v25 = vpack.c.bf16 %v768_v24, %v768_v24  ;;  %v2279_v36 = vpack.c.bf16 %v782_v35, %v782_v35 }
 0x1c9   : > { %v799_v26 = vunpack.c.l.b16 %v788_v25  ;;  %v877_v40 = vsel %vm875_vm9, %v2279_v36, 0 }
 0x1cb   : > { %v800_v27 = vpack.c.b16 %v799_v26, %v799_v26 }
 0x1cc   : > { %v769_v28 = vpop.f32.mrf.mxu0  ;;  %v783_v37 = vpop.f32.mrf.mxu1 }
 0x1cd   : > { %v770_v29 = vadd.f32 %v769_v28, %v711_v22  ;;  %915 = vrot.lane.b32.xlu0 %v800_v27, %s2029_s26  ;;  %801 = vrot.lane.b32.xlu2 %v800_v27, %s2030_s24  ;;  %v784_v41 = vadd.f32 %v783_v37, %v712_v33  ;;  %v984_v28 = vunpack.c.l.b16 %v2279_v36 }
 0x1cf   : > { %v789_v30 = vpack.c.bf16 %v770_v29, %v770_v29  ;;  %v2284_v42 = vpack.c.bf16 %v784_v41, %v784_v41 }
 0x1d1   : > { %v824_v31 = vunpack.c.l.b16 %v789_v30  ;;  %v896_v45 = vsel %vm875_vm9, %v2284_v42, 0 }
 0x1d3   : > { %v825_v32 = vpack.c.b16 %v824_v31, %v824_v31  ;;  %v2316_v31 = vpack.c.b16 %v984_v28, %v984_v28 }
 0x1d5   : > { %938 = vrot.lane.b32.xlu1 %v825_v32, %s2029_s26  ;;  %1067 = vrot.lane.b32.xlu0 %v825_v32, %s2031_s10 }
 0x1d6   : > { %826 = vrot.lane.b32.xlu2 %v825_v32, %s2030_s24 }
 0x1dd   : > { %1065 = vrot.lane.b32.xlu1 %v825_v32, %s2032_s20  ;;  %1167 = vrot.lane.b32.xlu0 %v800_v27, %s2033_s25 }
 0x1de   : > { %913 = vrot.lane.b32.xlu2 %v800_v27, %s2034_s27 }
 0x1e5   : > { %1165 = vrot.lane.b32.xlu1 %v800_v27, %s2035_s28  ;;  %1188 = vrot.lane.b32.xlu0 %v825_v32, %s2035_s28 }
 0x1e6   : > { %936 = vrot.lane.b32.xlu2 %v825_v32, %s2034_s27 }
 0x1ee   : > { %1044 = vrot.lane.b32.xlu2 %v800_v27, %s2031_s10 }
 0x1f6   : > { %1042 = vrot.lane.b32.xlu2 %v800_v27, %s2032_s20 }
 0x1fe   : > { %1190 = vrot.lane.b32.xlu2 %v825_v32, %s2033_s25 }
 0x227   : > { %v802_v38 = vpop.permute.xlu2 %801 }
 0x228   : > { %v808_v39 = vsel %vm803_vm8, %v802_v38, 0 }
 0x229   : > { %817 = vmatpush.bf16.xpose.msra.mxu2 %v808_v39 }
 0x230   : > { %v827_v43 = vpop.permute.xlu2 %826  ;;  %1768 = vmatmul.msk.bf16.vlgmr.msra.gmra.mxu2 %vm803_vm8, %v788_v25 }
 0x231   : > { %886 = vmatpush.bf16.msrb.mxu2 %v877_v40  ;;  %v832_v44 = vsel %vm803_vm8, %v827_v43, 0 }
 0x232   : > { %841 = vmatpush.bf16.xpose.msra.mxu3 %v832_v44 }
 0x238   : > { %v914_v46 = vpop.permute.xlu2 %913 }
 0x239   : > { %1769 = vmatmul.msk.bf16.vlgmr.msra.gmra.mxu3 %vm803_vm8, %v789_v30 }
 0x23a   : > { %905 = vmatpush.bf16.msrb.mxu3 %v896_v45 }
 0x23f   : > { %v916_v47 = vpop.permute.xlu0 %915 }
 0x240   : > { %v937_v48 = vpop.permute.xlu2 %936  ;;  %v921_v49 = vsel %vm803_vm8, %v916_v47, 0 }
 0x241   : > { %930 = vmatpush.bf16.xpose.msrb.mxu0 %v921_v49 }
 0x247   : > { %v939_v50 = vpop.permute.xlu1 %938  ;;  %v1068_v51 = vpop.permute.xlu0 %1067 }
 0x248   : > { %v1073_v52 = vsel %vm803_vm8, %v1068_v51, 0  ;;  %v1045_v53 = vpop.permute.xlu2 %1044  ;;  %1772 = vmatmul.msk.bf16.vlgmr.msrb.gmra.mxu0 %vm803_vm8, %v914_v46  ;;  %v944_v54 = vsel %vm803_vm8, %v939_v50, 0 }
 0x249   : > { %v1050_v55 = vsel %vm803_vm8, %v1045_v53, 0  ;;  %953 = vmatpush.bf16.xpose.msrb.mxu1 %v944_v54 }
 0x24a   : > { %1059 = vmatpush.bf16.xpose.msra.mxu0 %v1050_v55 }
 0x24f   : > { %v1168_v56 = vpop.permute.xlu0 %1167  ;;  %v1066_v61 = vpop.permute.xlu1 %1065 }
 0x250   : > { %v1173_v57 = vsel %vm803_vm8, %v1168_v56, 0  ;;  %v1043_v58 = vpop.permute.xlu2 %1042  ;;  %1773 = vmatmul.msk.bf16.vlgmr.msrb.gmra.mxu1 %vm803_vm8, %v937_v48 }
 0x251   : > { %1082 = vmatpush.bf16.xpose.msra.mxu1 %v1073_v52 }
 0x252   : > { %1182 = vmatpush.bf16.xpose.msrb.mxu0 %v1173_v57 }
 0x257   : > { %v1166_v62 = vpop.permute.xlu1 %1165  ;;  %v1189_v63 = vpop.permute.xlu0 %1188 }
 0x258   : > { %v1191_v59 = vpop.permute.xlu2 %1190  ;;  %1776 = vmatmul.msk.bf16.vlgmr.msra.gmra.mxu0 %vm803_vm8, %v1043_v58 }
 0x259   : > { %v1196_v60 = vsel %vm803_vm8, %v1191_v59, 0 }
 0x25a   : > { %1205 = vmatpush.bf16.xpose.msrb.mxu1 %v1196_v60 }
 0x260   : > { %1777 = vmatmul.msk.bf16.vlgmr.msra.gmra.mxu1 %vm803_vm8, %v1066_v61 }
 0x268   : > { %1780 = vmatmul.msk.bf16.vlgmr.msrb.gmra.mxu0 %vm803_vm8, %v1166_v62 }
 0x270   : > { %1781 = vmatmul.msk.bf16.vlgmr.msrb.gmra.mxu1 %vm803_vm8, %v1189_v63 }
 0x2b3   : > { %v819_v1 = vpop.f32.mrf.mxu2 }
 0x2b4   : > { %v820_v2 = vadd.f32 %v1931_v0, %v819_v1  ;;  %v1008_v1 = vunpack.c.l.b16 %v2284_v42 }
 0x2b6   : > { %v848_v3 = vsel %vm847_vm10, %v820_v2, -inf }
 0x2b7   : > { %849 = vmax.xlane.f32.xlu2 %v848_v3 }
 0x2bb   : > { %v821_v5 = vpop.f32.mrf.mxu2 }
 0x2bc   : > { %v843_v6 = vpop.f32.mrf.mxu3 }
 0x2bd   : > { %v844_v7 = vadd.f32 %v1932_v4, %v843_v6 }
 0x2bf   : > { %v851_v9 = vsel %vm847_vm10, %v844_v7, -inf }
 0x2c0   : > { %852 = vmax.xlane.f32.xlu1 %v851_v9 }
 0x2c4   : > { %v845_v11 = vpop.f32.mrf.mxu3 }
 0x2c5   : > { %v932_v12 = vpop.f32.mrf.mxu0 }
 0x2c6   : > { %v933_v13 = vadd.f32 %v1931_v0, %v932_v12 }
 0x2c8   : > { %v959_v14 = vsel %vm847_vm10, %v933_v13, -inf }
 0x2c9   : > { %960 = vmax.xlane.f32.xlu0 %v959_v14 }
 0x2cd   : > { %v934_v15 = vpop.f32.mrf.mxu0  ;;  %v955_v16 = vpop.f32.mrf.mxu1 }
 0x2ce   : > { %v956_v17 = vadd.f32 %v1932_v4, %v955_v16 }
 0x2d0   : > { %v962_v19 = vsel %vm847_vm10, %v956_v17, -inf }
 0x2d1   : > { %963 = vmax.xlane.f32.xlu2 %v962_v19 }
 0x2d5   : > { %v957_v20 = vpop.f32.mrf.mxu1  ;;  %v1061_v21 = vpop.f32.mrf.mxu0 }
 0x2d6   : > { %v1062_v22 = vadd.f32 %v1931_v0, %v1061_v21 }
 0x2d8   : > { %v1088_v23 = vsel %vm847_vm10, %v1062_v22, -inf }
 0x2d9   : > { %1089 = vmax.xlane.f32.xlu1 %v1088_v23 }
 0x2dd   : > { %v1063_v24 = vpop.f32.mrf.mxu0  ;;  %v1084_v25 = vpop.f32.mrf.mxu1 }
 0x2de   : > { %v1085_v26 = vadd.f32 %v1932_v4, %v1084_v25 }
 0x2e0   : > { %v1091_v27 = vsel %vm847_vm10, %v1085_v26, -inf }
 0x2e1   : > { %1092 = vmax.xlane.f32.xlu0 %v1091_v27 }
 0x2e5   : > { %v1086_v29 = vpop.f32.mrf.mxu1  ;;  %v1184_v30 = vpop.f32.mrf.mxu0 }
 0x2e6   : > { %v2323_v38 = vadd.f32 %v1931_v0, %v1184_v30 }
 0x2e8   : > { %v1211_v36 = vsel %vm847_vm10, %v2323_v38, -inf }
 0x2e9   : > { %986 = vrot.lane.b32.xlu2 %v2316_v31, %s2034_s27 }
 0x2ed   : > { %v1186_v32 = vpop.f32.mrf.mxu0  ;;  %v1207_v33 = vpop.f32.mrf.mxu1 }
 0x2ee   : > { %v1208_v34 = vadd.f32 %v1932_v4, %v1207_v33  ;;  %v1009_v4 = vpack.c.b16 %v1008_v1, %v1008_v1 }
 0x2f0   : > { %v1214_v35 = vsel %vm847_vm10, %v1208_v34, -inf }
 0x2f1   : > { %1215 = vmax.xlane.f32.xlu1 %v1214_v35 }
 0x2f5   : > { %1112 = vrot.lane.b32.xlu0 %v2316_v31, %s2032_s20  ;;  %v1209_v37 = vpop.f32.mrf.mxu1 }
 0x312   : > { %1212 = vmax.xlane.f32.xlu2 %v1211_v36 }
 0x32a   : > { %v850_v39 = vpop.xlane.xlu2 %849 }
 0x32b   : > { %v854_v40 = vsub.f32 %v820_v2, %v850_v39 }
 0x32d   : > { %v856_v41 = vmul.f32 1.442695, %v854_v40 }
 0x32f   : > { %1942 = vpow2.f32 %v856_v41 }
 0x333   : > { %v853_v43 = vpop.xlane.xlu1 %852 }
 0x334   : > { %v855_v44 = vsub.f32 %v844_v7, %v853_v43 }
 0x335   : > { %v2327_v45 = vpop.eup %1942 }
 0x336   : > { %v858_v46 = vmul.f32 1.442695, %v855_v44  ;;  %v860_v47 = vsel %vm847_vm10, %v2327_v45, 0.0 }
 0x337   : > { %861 = vadd.xlane.f32.xlu0 %v860_v47 }
 0x338   : > { %1944 = vpow2.f32 %v858_v46 }
 0x33c   : > { %v961_v48 = vpop.xlane.xlu0 %960 }
 0x33d   : > { %v965_v49 = vsub.f32 %v933_v13, %v961_v48 }
 0x33e   : > { %v2331_v50 = vpop.eup %1944 }
 0x33f   : > { %v967_v51 = vmul.f32 1.442695, %v965_v49  ;;  %v863_v52 = vsel %vm847_vm10, %v2331_v50, 0.0 }
 0x340   : > { %864 = vadd.xlane.f32.xlu2 %v863_v52 }
 0x341   : > { %1946 = vpow2.f32 %v967_v51 }
 0x344   : > { %v964_v53 = vpop.xlane.xlu2 %963 }
 0x345   : > { %v966_v54 = vsub.f32 %v956_v17, %v964_v53 }
 0x347   : > { %v2335_v55 = vpop.eup %1946  ;;  %v969_v56 = vmul.f32 1.442695, %v966_v54 }
 0x348   : > { %v971_v57 = vsel %vm847_vm10, %v2335_v55, 0.0 }
 0x349   : > { %1948 = vpow2.f32 %v969_v56  ;;  %972 = vadd.xlane.f32.xlu1 %v971_v57 }
 0x34c   : > { %v1090_v58 = vpop.xlane.xlu1 %1089  ;;  %v987_v59 = vpop.permute.xlu2 %986 }
 0x34d   : > { %v1094_v60 = vsub.f32 %v1062_v22, %v1090_v58  ;;  %v992_v61 = vsel %vm875_vm9, %v987_v59, 0 }
 0x34e   : > { %1001 = vmatpush.bf16.msra.mxu2 %v992_v61 }
 0x34f   : > { %v2340_v62 = vpop.eup %1948  ;;  %v1096_v63 = vmul.f32 1.442695, %v1094_v60 }
 0x350   : > { %v974_v0 = vsel %vm847_vm10, %v2340_v62, 0.0 }
 0x351   : > { %1950 = vpow2.f32 %v1096_v63  ;;  %975 = vadd.xlane.f32.xlu0 %v974_v0 }
 0x354   : > { %v1093_v2 = vpop.xlane.xlu0 %1092 }
 0x355   : > { %v1095_v3 = vsub.f32 %v1085_v26, %v1093_v2 }
 0x357   : > { %v1951_v5 = vpop.eup %1950  ;;  %v1098_v6 = vmul.f32 1.442695, %v1095_v3 }
 0x358   : > { %1133 = vrot.lane.b32.xlu2 %v1009_v4, %s2032_s20  ;;  %v1100_v7 = vsel %vm847_vm10, %v1951_v5, 0.0 }
 0x359   : > { %1952 = vpow2.f32 %v1098_v6  ;;  %1101 = vadd.xlane.f32.xlu0 %v1100_v7 }
 0x35f   : > { %v1953_v9 = vpop.eup %1952 }
 0x360   : > { %v1103_v11 = vsel %vm847_vm10, %v1953_v9, 0.0 }
 0x361   : > { %1104 = vadd.xlane.f32.xlu0 %v1103_v11 }
 0x362   : > { %1010 = vrot.lane.b32.xlu1 %v1009_v4, %s2034_s27 }
 0x364   : > { %v1216_v12 = vpop.xlane.xlu1 %1215 }
 0x365   : > { %v1218_v13 = vsub.f32 %v1208_v34, %v1216_v12 }
 0x367   : > { %v1221_v42 = vmul.f32 1.442695, %v1218_v13  ;;  %v1113_v22 = vpop.permute.xlu0 %1112 }
 0x368   : > { %v1118_v28 = vsel %vm875_vm9, %v1113_v22, 0  ;;  %v1868_v22 = vld [vmem:[%s2477_s6 + $0x18] sm:$0xff] }
 0x369   : > { %1954 = vpow2.f32 %v1221_v42  ;;  %1330 = vmatpush.bf16.msra.mxu0 %v1868_v22 }
 0x36f   : > { %v2351_v14 = vpop.eup %1954 }
 0x370   : > { %v1226_v15 = vsel %vm847_vm10, %v2351_v14, 0.0 }
 0x375   : > { %1235 = vrot.lane.b32.xlu0 %v2316_v31, %s2035_s28 }
 0x37d   : > { %1256 = vrot.lane.b32.xlu0 %v1009_v4, %s2035_s28 }
 0x381   : > { %1227 = vadd.xlane.f32.xlu2 %v1226_v15 }
 0x385   : > { %v1213_v16 = vpop.xlane.xlu2 %1212 }
 0x386   : > { %v1217_v17 = vsub.f32 %v2323_v38, %v1213_v16 }
 0x388   : > { %v1219_v19 = vmul.f32 1.442695, %v1217_v17 }
 0x38a   : > { %1956 = vpow2.f32 %v1219_v19 }
 0x390   : > { %v2357_v20 = vpop.eup %1956 }
 0x391   : > { %v1223_v21 = vsel %vm847_vm10, %v2357_v20, 0.0 }
 0x392   : > { %1224 = vadd.xlane.f32.xlu1 %v1223_v21 }
 0x3aa   : > { %v862_v23 = vpop.xlane.xlu0 %861 }
 0x3ab   : > { %1958 = vrcp.f32 %v862_v23  ;;  %v1867_v23 = vld [vmem:[%s2477_s6 + $0x10] sm:$0xff] }
 0x3ac   : > { %1331 = vmatpush.bf16.msra.mxu0 %v1867_v23 }
 0x3b1   : > { %v1959_v24 = vpop.eup %1958 }
 0x3b2   : > { %v868_v25 = vmul.f32 %v1959_v24, %v2327_v45  ;;  %v1866_v24 = vld [vmem:[%s2477_s6 + $0x8] sm:$0xff] }
 0x3b3   : > { %v865_v26 = vpop.xlane.xlu2 %864  ;;  %1332 = vmatpush.bf16.msra.mxu0 %v1866_v24 }
 0x3b4   : > { %1960 = vrcp.f32 %v865_v26  ;;  %v870_v27 = vpack.c.bf16 %v868_v25, %v868_v25  ;;  %v1865_v25 = vld [vmem:[%s2477_s6] sm:$0xff] }
 0x3b6   : > { %1770 = vmatmul.msk.bf16.vlgmr.msrb.gmra.mxu2 %vm847_vm10, %v870_v27 }
 0x3b7   : > { %1127 = vmatpush.bf16.msrb.mxu2 %v1118_v28  ;;  %1333 = vmatpush.bf16.msra.mxu0 %v1865_v25 }
 0x3ba   : > { %v1961_v29 = vpop.eup %1960 }
 0x3bb   : > { %v869_v30 = vmul.f32 %v1961_v29, %v2331_v50  ;;  %v1134_v40 = vpop.permute.xlu2 %1133 }
 0x3bc   : > { %v973_v31 = vpop.xlane.xlu1 %972  ;;  %v1139_v46 = vsel %vm875_vm9, %v1134_v40, 0 }
 0x3bd   : > { %1962 = vrcp.f32 %v973_v31  ;;  %v871_v32 = vpack.c.bf16 %v869_v30, %v869_v30 }
 0x3bf   : > { %1771 = vmatmul.msk.bf16.vlgmr.msrb.gmra.mxu3 %vm847_vm10, %v871_v32  ;;  %v1933_v32 = vld [vmem:[%s2478_s7] ss:$0 sm:$0xff] }
 0x3c3   : > { %v1963_v33 = vpop.eup %1962 }
 0x3c4   : > { %v979_v34 = vmul.f32 %v1963_v33, %v2335_v55  ;;  %v976_v35 = vpop.xlane.xlu0 %975 }
 0x3c5   : > { %1964 = vrcp.f32 %v976_v35 }
 0x3c6   : > { %v981_v37 = vpack.c.bf16 %v979_v34, %v979_v34 }
 0x3c8   : > { %1774 = vmatmul.msk.bf16.vlgmr.msra.gmra.mxu2 %vm847_vm10, %v981_v37 }
 0x3cb   : > { %v1965_v36 = vpop.eup %1964 }
 0x3cc   : > { %v1102_v38 = vpop.xlane.xlu0 %1101  ;;  %v980_v41 = vmul.f32 %v1965_v36, %v2340_v62 }
 0x3cd   : > { %1966 = vrcp.f32 %v1102_v38 }
 0x3ce   : > { %v982_v48 = vpack.c.bf16 %v980_v41, %v980_v41 }
 0x3d3   : > { %v1967_v39 = vpop.eup %1966 }
 0x3d4   : > { %v1108_v43 = vmul.f32 %v1967_v39, %v1951_v5  ;;  %v1011_v44 = vpop.permute.xlu1 %1010  ;;  %v1105_v49 = vpop.xlane.xlu0 %1104 }
 0x3d5   : > { %v1016_v45 = vsel %vm875_vm9, %v1011_v44, 0  ;;  %1968 = vrcp.f32 %v1105_v49 }
 0x3d6   : > { %v1110_v47 = vpack.c.bf16 %v1108_v43, %v1108_v43  ;;  %1025 = vmatpush.bf16.msra.mxu3 %v1016_v45 }
 0x3d8   : > { %1778 = vmatmul.msk.bf16.vlgmr.msrb.gmra.mxu2 %vm847_vm10, %v1110_v47 }
 0x3d9   : > { %1775 = vmatmul.msk.bf16.vlgmr.msra.gmra.mxu3 %vm847_vm10, %v982_v48 }
 0x3da   : > { %1148 = vmatpush.bf16.msrb.mxu3 %v1139_v46 }
 0x3db   : > { %v1969_v50 = vpop.eup %1968 }
 0x3dc   : > { %v1109_v51 = vmul.f32 %v1969_v50, %v1953_v9 }
 0x3de   : > { %v1111_v52 = vpack.c.bf16 %v1109_v51, %v1109_v51 }
 0x3e7   : > { %v1236_v53 = vpop.permute.xlu0 %1235 }
 0x3e8   : > { %v1241_v54 = vsel %vm875_vm9, %v1236_v53, 0 }
 0x3e9   : > { %1779 = vmatmul.msk.bf16.vlgmr.msrb.gmra.mxu3 %vm847_vm10, %v1111_v52  ;;  %1250 = vmatpush.bf16.msra.mxu2 %v1241_v54 }
 0x3ef   : > { %v1257_v55 = vpop.permute.xlu0 %1256 }
 0x3f0   : > { %v1262_v56 = vsel %vm875_vm9, %v1257_v55, 0 }
 0x3f1   : > { %1271 = vmatpush.bf16.msra.mxu3 %v1262_v56 }
 0x3f4   : > { %v1228_v57 = vpop.xlane.xlu2 %1227 }
 0x3f5   : > { %1970 = vrcp.f32 %v1228_v57 }
 0x3fb   : > { %v1971_v58 = vpop.eup %1970 }
 0x3fc   : > { %v1232_v59 = vmul.f32 %v1971_v58, %v2351_v14 }
 0x3fe   : > { %v1234_v60 = vpack.c.bf16 %v1232_v59, %v1232_v59 }
 0x400   : > { %1783 = vmatmul.msk.bf16.vlgmr.msra.gmra.mxu3 %vm847_vm10, %v1234_v60 }
 0x405   : > { %v1225_v61 = vpop.xlane.xlu1 %1224 }
 0x406   : > { %1972 = vrcp.f32 %v1225_v61 }
 0x40c   : > { %v1973_v62 = vpop.eup %1972 }
 0x40d   : > { %v1231_v63 = vmul.f32 %v1973_v62, %v2357_v20 }
 0x40f   : > { %v1233_v0 = vpack.c.bf16 %v1231_v63, %v1231_v63 }
 0x411   : > { %1782 = vmatmul.msk.bf16.vlgmr.msra.gmra.mxu2 %vm847_vm10, %v1233_v0  ;;  %v1934_v0 = vld [vmem:[%s2479_s8] ss:$0 sm:$0xff] }
 0x439   : > { %v888_v1 = vpop.f32.mrf.mxu2 }
 0x43a   : > { %911 = vst.msk [vmem:[#allocation2] sm:$0xff] %vm803_vm8, %v888_v1 }
 0x441   : > { %v890_v2 = vpop.f32.mrf.mxu2 }
 0x442   : > { %v907_v3 = vpop.f32.mrf.mxu3 }
 0x443   : > { %912 = vst.msk [vmem:[#allocation2 + $0x8] sm:$0xff] %vm803_vm8, %v907_v3 }
 0x44a   : > { %v909_v4 = vpop.f32.mrf.mxu3 }
 0x44b   : > { %v1003_v5 = vpop.f32.mrf.mxu2 }
 0x44c   : > { %1033 = vrot.lane.b32.xlu0 %v1003_v5, %s2033_s25 }
 0x453   : > { %v1005_v6 = vpop.f32.mrf.mxu2 }
 0x45b   : > { %v1129_v7 = vpop.f32.mrf.mxu2 }
 0x45c   : > { %1156 = vrot.lane.b32.xlu1 %v1129_v7, %s2031_s10  ;;  %v1027_v9 = vpop.f32.mrf.mxu3 }
 0x45d   : > { %1035 = vrot.lane.b32.xlu0 %v1027_v9, %s2033_s25 }
 0x463   : > { %v1131_v11 = vpop.f32.mrf.mxu2 }
 0x464   : > { %v1029_v12 = vpop.f32.mrf.mxu3 }
 0x46c   : > { %v1150_v13 = vpop.f32.mrf.mxu3 }
 0x46d   : > { %1158 = vrot.lane.b32.xlu0 %v1150_v13, %s2031_s10 }
 0x474   : > { %v1152_v42 = vpop.f32.mrf.mxu3 }
 0x483   : > { %v1273_v14 = vpop.f32.mrf.mxu3 }
 0x484   : > { %1281 = vrot.lane.b32.xlu0 %v1273_v14, %s2029_s26 }
 0x48b   : > { %v1275_v15 = vpop.f32.mrf.mxu3 }
 0x494   : > { %v1252_v16 = vpop.f32.mrf.mxu2 }
 0x495   : > { %1279 = vrot.lane.b32.xlu2 %v1252_v16, %s2029_s26 }
 0x49c   : > { %v1254_v17 = vpop.f32.mrf.mxu2 }
 0x4be   : > { %v1034_v19 = vpop.permute.xlu0 %1033 }
 0x4bf   : > { %1040 = vst.msk [vmem:[#allocation2] sm:$0xff] %vm1039_vm11, %v1034_v19 }
 0x4ce   : > { %v1157_v20 = vpop.permute.xlu1 %1156 }
 0x4cf   : > { %1163 = vst.msk [vmem:[#allocation2] sm:$0xff] %vm1162_vm12, %v1157_v20  ;;  %v1036_v21 = vpop.permute.xlu0 %1035 }
 0x4d0   : > { %1041 = vst.msk [vmem:[#allocation2 + $0x8] sm:$0xff] %vm1039_vm11, %v1036_v21 }
 0x4df   : > { %v1159_v26 = vpop.permute.xlu0 %1158 }
 0x4e0   : > { %1164 = vst.msk [vmem:[#allocation2 + $0x8] sm:$0xff] %vm1162_vm12, %v1159_v26 }
 0x4ef   : > { %v1280_v27 = vpop.permute.xlu2 %1279 }
 0x4f0   : > { %1286 = vst.msk [vmem:[#allocation2] sm:$0xff] %vm1285_vm13, %v1280_v27 }
 0x4f6   : > { %v1282_v28 = vpop.permute.xlu0 %1281 }
 0x4f7   : > { %1287 = vst.msk [vmem:[#allocation2 + $0x8] sm:$0xff] %vm1285_vm13, %v1282_v28  ;;  %v1288_v29 = vld [vmem:[#allocation2] sm:$0xff] }
 0x4fe   : > { %v1289_v30 = vld [vmem:[#allocation2 + $0x8] sm:$0xff] }
 0x4ff   : > { %v1290_v31 = vpack.c.bf16 %v1289_v30, %v1288_v29 }
 0x501   : > { %1800 = vmatmul.msk.bf16.vlgmr.msra.gmra.mxu0 %vm638_vm0, %v1290_v31 }
 0x57e   : > { %v1335_v33 = vpop.f32.mrf.mxu0 }
 0x57f   : > { %v1340_v34 = vadd.f32 %v1335_v33, %v2177_v8 }
 0x581   : > { %v1346_v35 = vadd.f32 %v1933_v32, %v1340_v34 }
 0x583   : > { %1348 = vst.msk [vmem:[#allocation3] sm:$0xff] %vm638_vm0, %v1346_v35  ;;  %v1352_v37 = vsel %vm638_vm0, %v1346_v35, 0.0 }
 0x584   : > { %1353 = vadd.xlane.f32.xlu0 %v1352_v37 }
 0x586   : > { %v1337_v38 = vpop.f32.mrf.mxu0 }
 0x587   : > { %v1341_v36 = vadd.f32 %v1337_v38, %v2184_v10 }
 0x589   : > { %v1347_v39 = vadd.f32 %v1933_v32, %v1341_v36 }
 0x58b   : > { %1349 = vst.msk [vmem:[#allocation3 + $0x8] sm:$0xff] %vm638_vm0, %v1347_v39  ;;  %v1355_v40 = vsel %vm638_vm0, %v1347_v39, 0.0 }
 0x58c   : > { %1356 = vadd.xlane.f32.xlu1 %v1355_v40 }
 0x5f7   : > { %v1354_v41 = vpop.xlane.xlu0 %1353 }
 0x5f8   : > { %v1358_v43 = vmul.f32 %v1354_v41, %v2188_v18 }
 0x5fa   : > { %v1360_v44 = vsub.f32 %v1346_v35, %v1358_v43 }
 0x5fc   : > { %v1362_v8 = vmul.f32 %v1360_v44, %v1360_v44 }
 0x5fe   : > { %v1364_v45 = vsel %vm638_vm0, %v1362_v8, 0.0 }
 0x5ff   : > { %1365 = vadd.xlane.f32.xlu2 %v1364_v45  ;;  %v1357_v46 = vpop.xlane.xlu1 %1356 }
 0x600   : > { %v1359_v47 = vmul.f32 %v1357_v46, %v2188_v18 }
 0x602   : > { %v1361_v48 = vsub.f32 %v1347_v39, %v1359_v47 }
 0x604   : > { %v1363_v49 = vmul.f32 %v1361_v48, %v1361_v48 }
 0x606   : > { %v1367_v10 = vsel %vm638_vm0, %v1363_v49, 0.0 }
 0x607   : > { %1368 = vadd.xlane.f32.xlu0 %v1367_v10 }
 0x672   : > { %v1366_v50 = vpop.xlane.xlu2 %1365 }
 0x673   : > { %v1370_v51 = vmul.f32 %v1366_v50, %v2188_v18 }
 0x675   : > { %v1372_v52 = vadd.f32 1e-05, %v1370_v51 }
 0x677   : > { %1974 = vrsqrt.f32 %v1372_v52  ;;  %vm1380_vm15 = vweird.f32 %v1372_v52 }
 0x67a   : > { %v1369_v53 = vpop.xlane.xlu0 %1368 }
 0x67b   : > { %v1371_v54 = vmul.f32 %v1369_v53, %v2188_v18  ;;  %v1935_v18 = vld [vmem:[%s2480_s9] ss:$0 sm:$0xff] }
 0x67d   : > { %v1975_v55 = vpop.eup %1974  ;;  %v1373_v56 = vadd.f32 1e-05, %v1371_v54 }
 0x67e   : > { %v1375_v57 = vmul.f32 %v1975_v55, %v1372_v52  ;;  %vm1381_vm14 = vweird.f32 %v1975_v55 }
 0x67f   : > { %1976 = vrsqrt.f32 %v1373_v56  ;;  %vm1382_vm1 = vmor %vm1380_vm15, %vm1381_vm14  ;;  %vm1390_vm3 = vweird.f32 %v1373_v56 }
 0x680   : > { %v1376_v58 = vmul.f32 %v1975_v55, %v1375_v57 }
 0x682   : > { %v1377_v59 = vmul.f32 0.5, %v1376_v58 }
 0x684   : > { %v1378_v60 = vsub.f32 1.5, %v1377_v59 }
 0x685   : > { %v1977_v61 = vpop.eup %1976 }
 0x686   : > { %v1379_v62 = vmul.f32 %v1975_v55, %v1378_v60  ;;  %v1385_v63 = vmul.f32 %v1977_v61, %v1373_v56  ;;  %vm1391_vm2 = vweird.f32 %v1977_v61 }
 0x687   : > { %vm1392_vm4 = vmor %vm1390_vm3, %vm1391_vm2 }
 0x688   : > { %v1383_v1 = vsel %vm1382_vm1, %v1975_v55, %v1379_v62  ;;  %v1386_v2 = vmul.f32 %v1977_v61, %v1385_v63 }
 0x689   : > { %v1394_v3 = vmul.f32 %v1383_v1, %v1360_v44 }
 0x68a   : > { %v1387_v4 = vmul.f32 0.5, %v1386_v2 }
 0x68b   : > { %v1399_v5 = vmul.f32 %v1934_v0, %v1394_v3 }
 0x68c   : > { %v1388_v6 = vsub.f32 1.5, %v1387_v4 }
 0x68d   : > { %v1404_v7 = vadd.f32 %v1935_v18, %v1399_v5 }
 0x68e   : > { %v1389_v9 = vmul.f32 %v1977_v61, %v1388_v6 }
 0x68f   : > { %1406 = vst.msk [vmem:[#allocation2] sm:$0xff] %vm638_vm0, %v1404_v7 }
 0x690   : > { %v1393_v11 = vsel %vm1392_vm4, %v1977_v61, %v1389_v9 }
 0x691   : > { %v1395_v12 = vmul.f32 %v1393_v11, %v1361_v48 }
 0x693   : > { %v1400_v13 = vmul.f32 %v1934_v0, %v1395_v12 }
 0x695   : > { %v1405_v42 = vadd.f32 %v1935_v18, %v1400_v13 }
 0x697   : > { %1407 = vst.msk [vmem:[#allocation2 + $0x8] sm:$0xff] %vm638_vm0, %v1405_v42 }
 0x698 PF: > { %v1872_v14 = vld [vmem:[%s2171_s16 + $0x18] sm:$0xff]  ;;  %v1871_v15 = vld [vmem:[%s2171_s16 + $0x10] sm:$0xff]  ;;  %v1870_v16 = vld [vmem:[%s2171_s16 + $0x8] sm:$0xff]  ;;  %vm1447_vm0 = vcmask 523264   ;;  %s2492_s28 = scalar_lea.vmem %s2482_s11, %s2160_s23  ;;  %p1852_p12 = scmp.ne.s32.totalorder %s2018_s15, 1 }
 0x699   : > { %1455 = vmatpush.bf16.msra.mxu0 %v1872_v14  ;;  %v1869_v17 = vld [vmem:[%s2171_s16] sm:$0xff]  ;;  %v1880_v22 = vld [vmem:[%s2169_s18 + $0x38] sm:$0xff]  ;;  %v1879_v23 = vld [vmem:[%s2169_s18 + $0x30] sm:$0xff] }
 0x69a   : > { %v1408_v19 = vld [vmem:[#allocation2] sm:$0xff]  ;;  %1574 = vmatpush.bf16.msra.mxu1 %v1880_v22  ;;  %v1878_v24 = vld [vmem:[%s2169_s18 + $0x28] sm:$0xff]  ;;  %v1876_v26 = vld [vmem:[%s2169_s18 + $0x18] sm:$0xff] }
 0x69b   : > { %v1877_v25 = vld [vmem:[%s2169_s18 + $0x20] sm:$0xff]  ;;  %v1875_v29 = vld [vmem:[%s2169_s18 + $0x10] sm:$0xff]  ;;  %v1874_v32 = vld [vmem:[%s2169_s18 + $0x8] sm:$0xff] }
 0x69c   : > { %v1978_v27 = vld [vmem:[%s2492_s28] ss:$0 sm:$0xff]  ;;  %v1507_v1 = vld [vmem:[#allocation3] sm:$0xff]  ;;  %v1508_v3 = vld [vmem:[#allocation3 + $0x8] sm:$0xff] }
 0x69d   : > { %1456 = vmatpush.bf16.msra.mxu0 %v1871_v15  ;;  %v1873_v35 = vld [vmem:[%s2169_s18] sm:$0xff] }
 0x69e   : > { %v1409_v20 = vld [vmem:[#allocation2 + $0x8] sm:$0xff]  ;;  %1575 = vmatpush.bf16.msra.mxu1 %v1879_v23 }
 0x69f   : > { %v1410_v21 = vpack.c.bf16 %v1409_v20, %v1408_v19 }
 0x6a1   : > { %1457 = vmatpush.bf16.msra.mxu0 %v1870_v16 }
 0x6a2   : > { %1576 = vmatpush.bf16.msra.mxu1 %v1878_v24 }
 0x6a5   : > { %1458 = vmatpush.bf16.msra.mxu0 %v1869_v17 }
 0x6a6   : > { %1577 = vmatpush.bf16.msra.mxu1 %v1877_v25 }
 0x6a8   : > { %1817 = vmatmul.msk.bf16.vlgmr.msra.gmra.mxu0 %vm1447_vm0, %v1410_v21 }
 0x6aa   : > { %1578 = vmatpush.bf16.msra.mxu1 %v1876_v26 }
 0x6ae   : > { %1579 = vmatpush.bf16.msra.mxu1 %v1875_v29 }
 0x6b2   : > { %1580 = vmatpush.bf16.msra.mxu1 %v1874_v32 }
 0x6b6   : > { %1581 = vmatpush.bf16.msra.mxu1 %v1873_v35 }
 0x725   : > { %v1460_v28 = vpop.f32.mrf.mxu0 }
 0x726   : > { %v1461_v30 = vadd.f32 %v1978_v27, %v1460_v28 }
 0x728   : > { %v1818_v31 = vmul.f32 -1.702, %v1461_v30 }
 0x72a   : > { %v1469_v33 = vmul.f32 1.442695, %v1818_v31 }
 0x72c   : > { %1979 = vpow2.f32 %v1469_v33 }
 0x72d   : > { %v1462_v34 = vpop.f32.mrf.mxu0 }
 0x72e   : > { %v1463_v37 = vadd.f32 %v1978_v27, %v1462_v34 }
 0x730   : > { %v1819_v38 = vmul.f32 -1.702, %v1463_v37 }
 0x732   : > { %v1980_v36 = vpop.eup %1979  ;;  %v1471_v39 = vmul.f32 1.442695, %v1819_v38 }
 0x733   : > { %v1473_v40 = vadd.f32 1.0, %v1980_v36 }
 0x734   : > { %1981 = vpow2.f32 %v1471_v39 }
 0x735   : > { %1983 = vrcp.f32 %v1473_v40  ;;  %v1486_v10 = vand.u32 2147483648, %v1473_v40  ;;  %vm1480_vm6 = vweird.f32 %v1473_v40  ;;  %v1484_v50 = vand.u32 2147483647, %v1473_v40 }
 0x737   : > { %v1487_v56 = vor.u32 1.1754944e-38, %v1486_v10  ;;  %vm1485_vm9 = vcmp.eq.f32.partialorder %v1484_v50, 8.507059e+37 }
 0x73a   : > { %v1982_v41 = vpop.eup %1981 }
 0x73b   : > { %v1984_v43 = vpop.eup %1983  ;;  %v1474_v44 = vadd.f32 1.0, %v1982_v41 }
 0x73c   : > { %v1476_v8 = vmul.f32 %v1984_v43, %v1473_v40  ;;  %vm1481_vm5 = vweird.f32 %v1984_v43 }
 0x73d   : > { %1985 = vrcp.f32 %v1474_v44  ;;  %vm1482_vm7 = vmor %vm1480_vm6, %vm1481_vm5  ;;  %v1501_v52 = vand.u32 2147483648, %v1474_v44  ;;  %v1499_v55 = vand.u32 2147483647, %v1474_v44  ;;  %vm1495_vm10 = vweird.f32 %v1474_v44 }
 0x73e   : > { %v1477_v45 = vsub.f32 1.0, %v1476_v8 }
 0x73f   : > { %v1502_v59 = vor.u32 1.1754944e-38, %v1501_v52  ;;  %vm1500_vm12 = vcmp.eq.f32.partialorder %v1499_v55, 8.507059e+37 }
 0x740   : > { %v1478_v46 = vmul.f32 %v1984_v43, %v1477_v45 }
 0x742   : > { %v1479_v48 = vadd.f32 %v1984_v43, %v1478_v46 }
 0x743   : > { %v1986_v47 = vpop.eup %1985 }
 0x744   : > { %v1491_v49 = vmul.f32 %v1986_v47, %v1474_v44  ;;  %v1483_v53 = vsel %vm1482_vm7, %v1984_v43, %v1479_v48  ;;  %vm1496_vm8 = vweird.f32 %v1986_v47 }
 0x745   : > { %v1488_v58 = vsel %vm1485_vm9, %v1487_v56, %v1483_v53  ;;  %vm1497_vm11 = vmor %vm1495_vm10, %vm1496_vm8 }
 0x746   : > { %v1492_v51 = vsub.f32 1.0, %v1491_v49  ;;  %v1505_v62 = vmul.f32 %v1488_v58, %v1461_v30 }
 0x748   : > { %v1493_v54 = vmul.f32 %v1986_v47, %v1492_v51 }
 0x74a   : > { %v1494_v57 = vadd.f32 %v1986_v47, %v1493_v54 }
 0x74c   : > { %v1498_v60 = vsel %vm1497_vm11, %v1986_v47, %v1494_v57 }
 0x74d   : > { %v1503_v61 = vsel %vm1500_vm12, %v1502_v59, %v1498_v60 }
 0x74e   : > { %v1506_v63 = vmul.f32 %v1503_v61, %v1463_v37 }
 0x750   : > { %v1509_v0 = vpack.c.bf16 %v1506_v63, %v1505_v62 }
 0x752   : > { %1582 = vmatmul.bf16.vlgmr.msra.gmra.mxu1 %v1509_v0 }
 0x7cf   : > { %v1583_v2 = vpop.f32.mrf.mxu1 }
 0x7d0   : > { %v1588_v18 = vadd.f32 %v1583_v2, %v1507_v1 }
 0x7d2   : > { %1590 = vst.msk [vmem:[#allocation3] sm:$0xff] %vm1447_vm0, %v1588_v18 }
 0x7d6   : > { %1595 = sbr.rel (%p1852_p12) target bundleno = 2021 (0x7e5), region = 125 }
 0x7d7   : > { %v1585_v4 = vpop.f32.mrf.mxu1 }
 0x7d8   : > { %v1589_v5 = vadd.f32 %v1585_v4, %v1508_v3 }
 0x7da   : > { %1591 = vst.msk [vmem:[#allocation3 + $0x8] sm:$0xff] %vm1447_vm0, %v1589_v5 }
 0x7db   : > { %v1596_v6 = vld [vmem:[#allocation3] sm:$0xff]  ;;  %v1987_v7 = vld [vmem:[%s2484_s13] ss:$0 sm:$0xff] }
 0x7dc   : > { %v1602_v11 = vadd.f32 %v1987_v7, %v1596_v6 }
 0x7de   : > { %1604 = vst.msk [vmem:[%s2485_s14] sm:$0xff] %vm1447_vm0, %v1602_v11 }
 0x7e1   : > { %v1597_v9 = vld [vmem:[#allocation3 + $0x8] sm:$0xff] }
 0x7e2   : > { %v1603_v12 = vadd.f32 %v1987_v7, %v1597_v9 }
 0x7e4   : > { %1605 = vst.msk [vmem:[%s2485_s14 + $0x8] sm:$0xff] %vm1447_vm0, %v1603_v12 }
 0x7e5 PF: > { %s24_s17 = sadd.s32 1, %s2026_s17   ;;  %s2493_s15 = sld [smem:[#allocation5_spill]] }
 0x7e6   : > { %p21_p13 = scmp.ge.s32.totalorder %s24_s17, 4   ;;  %s2494_s16 = sld [smem:[#allocation6_spill]] }
 0x7e7   : > { %s2495_s29 = smov %s2014_s30  ;;  %s2496_s30 = smov %s2146_s21 }
 0x7e8   :  { %23 = sbr.rel (!%p21_p13) target bundleno = 5 (0x5), region = 172 }

</bundles_post_ra>
